<compile_context>
chip_gen: v6e
topology: v6e:2x2x1
jax: 0.10.0
libtpu: 0.0.40
codegen_flags: <defaults>
</compile_context>

<pallas_src>
import jax
import jax.numpy as jnp
from jax.experimental import pallas as pl
from jax.experimental.pallas import tpu as pltpu

INPUT_SIZE = 121
IN_PAD = 128              # padded contraction dim of the first layer
H1 = 512
H2 = 512
H3 = 1024
LATENT = 100
HEAD_PAD = 128            # each head padded to 128 lanes
HEAD_OUT = 2 * HEAD_PAD   # fused mu|logvar output width (256)


def _round_up(n, m):
    return (n + m - 1) // m * m


# --------------------------------------------------------------------------
# Kernel: full MLP fused in one body.
#   layer1: bf16 weights;  layers 2/3 + head: int8 weights + per-channel scale
#   f32 accumulation on the MXU; activations carried as bf16.
# --------------------------------------------------------------------------
def encoder_kernel(x_ref,
                   w1_ref, b1_ref,
                   w2_ref, s2_ref, b2_ref,
                   w3_ref, s3_ref, b3_ref,
                   wh_ref, sh_ref, bh_ref,
                   out_ref,
                   xp_ref):
    # In-kernel zero-pad (121 -> 128 lanes) + bf16 cast of the input tile.
    xp_ref[...] = jnp.zeros_like(xp_ref)
    xp_ref[:, :INPUT_SIZE] = x_ref[...].astype(jnp.bfloat16)

    # layer 1 (bf16 weights)
    h = jnp.dot(xp_ref[...], w1_ref[...], preferred_element_type=jnp.float32)
    h = jnp.maximum(h + b1_ref[...], 0.0).astype(jnp.bfloat16)

    # layer 2 (int8 weights, scale applied after the f32 accumulate)
    h = jnp.dot(h, w2_ref[...].astype(jnp.bfloat16),
                preferred_element_type=jnp.float32) * s2_ref[...]
    h = jnp.maximum(h + b2_ref[...], 0.0).astype(jnp.bfloat16)

    # layer 3
    h = jnp.dot(h, w3_ref[...].astype(jnp.bfloat16),
                preferred_element_type=jnp.float32) * s3_ref[...]
    h = jnp.maximum(h + b3_ref[...], 0.0).astype(jnp.bfloat16)

    # fused mu|logvar head (lane-dense 256-wide output, stored as bf16)
    out = jnp.dot(h, wh_ref[...].astype(jnp.bfloat16),
                  preferred_element_type=jnp.float32) * sh_ref[...] + bh_ref[...]
    out_ref[...] = out.astype(out_ref.dtype)


# --------------------------------------------------------------------------
# Wrapper
# --------------------------------------------------------------------------
def encoder_forward(x, prepared_params):
    """x: (B, 121) f32.  Returns (mu, logvar), each (B, 100) f32."""
    (w1, b1, w2, s2, b2, w3, s3, b3, wh, sh, bh) = prepared_params
    B = x.shape[0]

    # Batch tile: single tile (rounded to 16 rows for bf16 sublane packing)
    # for small batches, 512 rows otherwise.
    if B <= 512:
        TB = _round_up(B, 16)
    else:
        TB = 512
    B_pad = _round_up(B, TB)
    nb = B_pad // TB

    # Only pad the batch dim if needed; feature dim stays 121 (padded in-kernel).
    if B_pad != B:
        x_in = jnp.zeros((B_pad, INPUT_SIZE), x.dtype).at[:B].set(x)
    else:
        x_in = x

    flops = 2 * B_pad * (IN_PAD * H1 + H1 * H2 + H2 * H3 + H3 * HEAD_OUT)
    bytes_accessed = (int(x_in.size) * x_in.dtype.itemsize
                      + sum(int(p.size) * p.dtype.itemsize
                            for p in prepared_params)
                      + B_pad * HEAD_OUT * 2)

    def const_spec(shape):
        # Constant block index: DMA'd once, VMEM-resident across batch tiles.
        return pl.BlockSpec(shape, lambda i: (0, 0))

    # Single TensorCore in the weight-DMA-bound regime; megacore only at large B.
    semantics = ("parallel",) if B >= 1024 else ("arbitrary",)

    out = pl.pallas_call(
        encoder_kernel,
        out_shape=jax.ShapeDtypeStruct((B_pad, HEAD_OUT), jnp.bfloat16),
        grid=(nb,),
        in_specs=[
            pl.BlockSpec((TB, INPUT_SIZE), lambda i: (i, 0)),
            const_spec(w1.shape), const_spec(b1.shape),
            const_spec(w2.shape), const_spec(s2.shape), const_spec(b2.shape),
            const_spec(w3.shape), const_spec(s3.shape), const_spec(b3.shape),
            const_spec(wh.shape), const_spec(sh.shape), const_spec(bh.shape),
        ],
        out_specs=pl.BlockSpec((TB, HEAD_OUT), lambda i: (i, 0)),
        scratch_shapes=[pltpu.VMEM((TB, IN_PAD), jnp.bfloat16)],
        compiler_params=pltpu.CompilerParams(
            dimension_semantics=semantics,
            vmem_limit_bytes=32 * 1024 * 1024),
        cost_estimate=pl.CostEstimate(flops=flops,
                                      transcendentals=0,
                                      bytes_accessed=bytes_accessed),
    )(x_in, w1, b1, w2, s2, b2, w3, s3, b3, wh, sh, bh)

    mu = out[:B, :LATENT].astype(jnp.float32)
    logvar = out[:B, HEAD_PAD:HEAD_PAD + LATENT].astype(jnp.float32)
    return mu, logvar


# --------------------------------------------------------------------------
# Parameter init (mirrors PyTorch nn.Linear default) + packing for the kernel
# --------------------------------------------------------------------------
def init_linear(key, fan_in, fan_out):
    kw, kb = jax.random.split(key)
    bound = 1.0 / jnp.sqrt(jnp.float32(fan_in))
    w = jax.random.uniform(kw, (fan_in, fan_out), jnp.float32, -bound, bound)
    b = jax.random.uniform(kb, (1, fan_out), jnp.float32, -bound, bound)
    return w, b


def make_params(key):
    k1, k2, k3, k4, k5 = jax.random.split(key, 5)
    w1, b1 = init_linear(k1, INPUT_SIZE, H1)
    w2, b2 = init_linear(k2, H1, H2)
    w3, b3 = init_linear(k3, H2, H3)
    wmu, bmu = init_linear(k4, H3, LATENT)
    wlv, blv = init_linear(k5, H3, LATENT)
    return (w1, b1, w2, b2, w3, b3, wmu, bmu, wlv, blv)


def _quantize_int8(w):
    """Per-output-channel symmetric int8 quantization."""
    max_abs = jnp.max(jnp.abs(w), axis=0, keepdims=True)      # (1, N)
    scale = jnp.where(max_abs > 0, max_abs, 1.0) / 127.0
    wq = jnp.clip(jnp.round(w / scale), -127, 127).astype(jnp.int8)
    return wq, scale.astype(jnp.float32)


def prepare_params(params):
    """Pad / fuse / quantize weights for the kernel (done once, host-side)."""
    (w1, b1, w2, b2, w3, b3, wmu, bmu, wlv, blv) = params

    # pad first-layer contraction dim 121 -> 128 (zeros); keep bf16 (tiny).
    w1p = jnp.zeros((IN_PAD, H1), jnp.float32).at[:INPUT_SIZE].set(w1)

    # fuse heads, each zero-padded to 128 lanes -> (1024, 256), (1, 256)
    wh = jnp.zeros((H3, HEAD_OUT), jnp.float32)
    wh = wh.at[:, :LATENT].set(wmu)
    wh = wh.at[:, HEAD_PAD:HEAD_PAD + LATENT].set(wlv)
    bh = jnp.zeros((1, HEAD_OUT), jnp.float32)
    bh = bh.at[:, :LATENT].set(bmu)
    bh = bh.at[:, HEAD_PAD:HEAD_PAD + LATENT].set(blv)

    w2q, s2 = _quantize_int8(w2)
    w3q, s3 = _quantize_int8(w3)
    whq, sh = _quantize_int8(wh)

    return (w1p.astype(jnp.bfloat16), b1,
            w2q, s2, b2,
            w3q, s3, b3,
            whq, sh, bh)


# --------------------------------------------------------------------------
# Plain-JAX references
# --------------------------------------------------------------------------
def reference_prepared(x, prepared_params):
    """Mirrors the kernel's bf16 / int8-per-channel arithmetic."""
    (w1, b1, w2, s2, b2, w3, s3, b3, wh, sh, bh) = prepared_params
    B = x.shape[0]
    xp = jnp.zeros((B, IN_PAD), jnp.bfloat16).at[:, :INPUT_SIZE].set(
        x.astype(jnp.bfloat16))
    h = jnp.dot(xp, w1, preferred_element_type=jnp.float32) + b1
    h = jnp.maximum(h, 0.0).astype(jnp.bfloat16)
    h = jnp.dot(h, w2.astype(jnp.bfloat16),
                preferred_element_type=jnp.float32) * s2 + b2
    h = jnp.maximum(h, 0.0).astype(jnp.bfloat16)
    h = jnp.dot(h, w3.astype(jnp.bfloat16),
                preferred_element_type=jnp.float32) * s3 + b3
    h = jnp.maximum(h, 0.0).astype(jnp.bfloat16)
    out = (jnp.dot(h, wh.astype(jnp.bfloat16),
                   preferred_element_type=jnp.float32) * sh + bh
           ).astype(jnp.bfloat16)
    return (out[:, :LATENT].astype(jnp.float32),
            out[:, HEAD_PAD:HEAD_PAD + LATENT].astype(jnp.float32))


def reference_f32(x, params):
    """Exact PyTorch-module semantics (f32)."""
    (w1, b1, w2, b2, w3, b3, wmu, bmu, wlv, blv) = params
    h = jnp.maximum(x @ w1 + b1, 0.0)
    h = jnp.maximum(h @ w2 + b2, 0.0)
    h = jnp.maximum(h @ w3 + b3, 0.0)
    return h @ wmu + bmu, h @ wlv + blv


if __name__ == "__main__":
    key = jax.random.PRNGKey(0)
    kx, kp = jax.random.split(key)

    B = 8  # small example batch
    x = jax.random.normal(kx, (B, INPUT_SIZE), jnp.float32)
    params = make_params(kp)
    prepared = prepare_params(params)

    fwd = jax.jit(encoder_forward)
    mu, logvar = jax.block_until_ready(fwd(x, prepared))

    assert mu.shape == (B, LATENT) and logvar.shape == (B, LATENT)

    # Check against a reference with identical bf16 / int8 arithmetic.
    mu_r, lv_r = reference_prepared(x, prepared)
    assert jnp.allclose(mu, mu_r, atol=1e-2, rtol=1e-2)
    assert jnp.allclose(logvar, lv_r, atol=1e-2, rtol=1e-2)

    # Loose sanity check against the exact f32 PyTorch-equivalent math
    # (bf16 activations + int8 per-channel weights introduce ~1% error).
    mu_f, lv_f = reference_f32(x, params)
    assert jnp.allclose(mu, mu_f, atol=5e-2, rtol=5e-2)
    assert jnp.allclose(logvar, lv_f, atol=5e-2, rtol=5e-2)

    print("KERNEL_OK")
</pallas_src>

<mosaic_0001>
module attributes {stable_mosaic.version = 11 : i64} {
  func.func @encoder_kernel(%arg0: i32, %arg1: memref<16x121xf32, #tpu.memory_space<vmem>>, %arg2: memref<128x512xbf16, #tpu.memory_space<vmem>>, %arg3: memref<1x512xf32, #tpu.memory_space<vmem>>, %arg4: memref<512x512xi8, #tpu.memory_space<vmem>>, %arg5: memref<1x512xf32, #tpu.memory_space<vmem>>, %arg6: memref<1x512xf32, #tpu.memory_space<vmem>>, %arg7: memref<512x1024xi8, #tpu.memory_space<vmem>>, %arg8: memref<1x1024xf32, #tpu.memory_space<vmem>>, %arg9: memref<1x1024xf32, #tpu.memory_space<vmem>>, %arg10: memref<1024x256xi8, #tpu.memory_space<vmem>>, %arg11: memref<1x256xf32, #tpu.memory_space<vmem>>, %arg12: memref<1x256xf32, #tpu.memory_space<vmem>>, %arg13: memref<16x256xbf16, #tpu.memory_space<vmem>>, %arg14: memref<16x128xbf16, #tpu.memory_space<vmem>>) attributes {dimension_semantics = [#tpu.dimension_semantics<arbitrary>], iteration_bounds = array<i64: 1>, scalar_prefetch = 0 : i64, scratch_operands = 1 : i64, tpu.core_type = #tpu.core_type<tc>, window_params = [{transform_indices = @transform_0, window_bounds = array<i64: 16, 121>}, {pipeline_mode = #tpu.pipeline_mode<synchronous>, transform_indices = @transform_1, window_bounds = array<i64: 128, 512>}, {pipeline_mode = #tpu.pipeline_mode<synchronous>, transform_indices = @transform_2, window_bounds = array<i64: 1, 512>}, {pipeline_mode = #tpu.pipeline_mode<synchronous>, transform_indices = @transform_3, window_bounds = array<i64: 512, 512>}, {pipeline_mode = #tpu.pipeline_mode<synchronous>, transform_indices = @transform_4, window_bounds = array<i64: 1, 512>}, {pipeline_mode = #tpu.pipeline_mode<synchronous>, transform_indices = @transform_5, window_bounds = array<i64: 1, 512>}, {pipeline_mode = #tpu.pipeline_mode<synchronous>, transform_indices = @transform_6, window_bounds = array<i64: 512, 1024>}, {pipeline_mode = #tpu.pipeline_mode<synchronous>, transform_indices = @transform_7, window_bounds = array<i64: 1, 1024>}, {pipeline_mode = #tpu.pipeline_mode<synchronous>, transform_indices = @transform_8, window_bounds = array<i64: 1, 1024>}, {pipeline_mode = #tpu.pipeline_mode<synchronous>, transform_indices = @transform_9, window_bounds = array<i64: 1024, 256>}, {pipeline_mode = #tpu.pipeline_mode<synchronous>, transform_indices = @transform_10, window_bounds = array<i64: 1, 256>}, {pipeline_mode = #tpu.pipeline_mode<synchronous>, transform_indices = @transform_11, window_bounds = array<i64: 1, 256>}, {transform_indices = @transform_12, window_bounds = array<i64: 16, 256>}]} {
    %cst = arith.constant 0.000000e+00 : bf16
    %0 = vector.broadcast %cst : bf16 to vector<16x128xbf16>
    %c0 = arith.constant 0 : index
    %c0_0 = arith.constant 0 : index
    %1 = vector.load %arg14[%c0, %c0_0] : memref<16x128xbf16, #tpu.memory_space<vmem>>, vector<16x128xbf16>
    tpu.vector_store %arg14[%c0, %c0_0], %0 {strides = array<i32>} : memref<16x128xbf16, #tpu.memory_space<vmem>>, vector<16x128xbf16>,
    %c0_1 = arith.constant 0 : index
    %c0_2 = arith.constant 0 : index
    %2 = vector.load %arg1[%c0_1, %c0_2] : memref<16x121xf32, #tpu.memory_space<vmem>>, vector<16x121xf32>
    %3 = arith.truncf %2 : vector<16x121xf32> to vector<16x121xbf16>
    %c0_3 = arith.constant 0 : index
    %c0_4 = arith.constant 0 : index
    %4 = vector.load %arg14[%c0_3, %c0_4] : memref<16x128xbf16, #tpu.memory_space<vmem>>, vector<16x121xbf16>
    tpu.vector_store %arg14[%c0_3, %c0_4], %3 {strides = array<i32>} : memref<16x128xbf16, #tpu.memory_space<vmem>>, vector<16x121xbf16>,
    %c0_5 = arith.constant 0 : index
    %c0_6 = arith.constant 0 : index
    %5 = vector.load %arg14[%c0_5, %c0_6] : memref<16x128xbf16, #tpu.memory_space<vmem>>, vector<16x128xbf16>
    %c0_7 = arith.constant 0 : index
    %c0_8 = arith.constant 0 : index
    %6 = vector.load %arg2[%c0_7, %c0_8] : memref<128x512xbf16, #tpu.memory_space<vmem>>, vector<128x512xbf16>
    %cst_9 = arith.constant dense<0.000000e+00> : vector<16x512xf32>
    %7 = tpu.matmul %5, %6, %cst_9 {dimension_numbers = #tpu.dot_dimension_numbers<[1], [0], [0], [1], [0, 0, 1, 1], [], []>} : vector<16x128xbf16>, vector<128x512xbf16>, vector<16x512xf32> -> vector<16x512xf32>
    %c0_10 = arith.constant 0 : index
    %c0_11 = arith.constant 0 : index
    %8 = vector.load %arg3[%c0_10, %c0_11] : memref<1x512xf32, #tpu.memory_space<vmem>>, vector<1x512xf32>
    %9 = vector.broadcast %8 : vector<1x512xf32> to vector<16x512xf32>
    %10 = arith.addf %7, %9 : vector<16x512xf32>
    %cst_12 = arith.constant 0.000000e+00 : f32
    %11 = vector.broadcast %cst_12 : f32 to vector<16x512xf32>
    %12 = arith.maximumf %10, %11 : vector<16x512xf32>
    %13 = arith.truncf %12 : vector<16x512xf32> to vector<16x512xbf16>
    %c0_13 = arith.constant 0 : index
    %c0_14 = arith.constant 0 : index
    %14 = vector.load %arg4[%c0_13, %c0_14] : memref<512x512xi8, #tpu.memory_space<vmem>>, vector<512x512xi8>
    %15 = arith.sitofp %14 : vector<512x512xi8> to vector<512x512xbf16>
    %cst_15 = arith.constant dense<0.000000e+00> : vector<16x512xf32>
    %16 = tpu.matmul %13, %15, %cst_15 {dimension_numbers = #tpu.dot_dimension_numbers<[1], [0], [0], [1], [0, 0, 1, 1], [], []>} : vector<16x512xbf16>, vector<512x512xbf16>, vector<16x512xf32> -> vector<16x512xf32>
    %c0_16 = arith.constant 0 : index
    %c0_17 = arith.constant 0 : index
    %17 = vector.load %arg5[%c0_16, %c0_17] : memref<1x512xf32, #tpu.memory_space<vmem>>, vector<1x512xf32>
    %18 = vector.broadcast %17 : vector<1x512xf32> to vector<16x512xf32>
    %19 = arith.mulf %16, %18 : vector<16x512xf32>
    %c0_18 = arith.constant 0 : index
    %c0_19 = arith.constant 0 : index
    %20 = vector.load %arg6[%c0_18, %c0_19] : memref<1x512xf32, #tpu.memory_space<vmem>>, vector<1x512xf32>
    %21 = vector.broadcast %20 : vector<1x512xf32> to vector<16x512xf32>
    %22 = arith.addf %19, %21 : vector<16x512xf32>
    %cst_20 = arith.constant 0.000000e+00 : f32
    %23 = vector.broadcast %cst_20 : f32 to vector<16x512xf32>
    %24 = arith.maximumf %22, %23 : vector<16x512xf32>
    %25 = arith.truncf %24 : vector<16x512xf32> to vector<16x512xbf16>
    %c0_21 = arith.constant 0 : index
    %c0_22 = arith.constant 0 : index
    %26 = vector.load %arg7[%c0_21, %c0_22] : memref<512x1024xi8, #tpu.memory_space<vmem>>, vector<512x1024xi8>
    %27 = arith.sitofp %26 : vector<512x1024xi8> to vector<512x1024xbf16>
    %cst_23 = arith.constant dense<0.000000e+00> : vector<16x1024xf32>
    %28 = tpu.matmul %25, %27, %cst_23 {dimension_numbers = #tpu.dot_dimension_numbers<[1], [0], [0], [1], [0, 0, 1, 1], [], []>} : vector<16x512xbf16>, vector<512x1024xbf16>, vector<16x1024xf32> -> vector<16x1024xf32>
    %c0_24 = arith.constant 0 : index
    %c0_25 = arith.constant 0 : index
    %29 = vector.load %arg8[%c0_24, %c0_25] : memref<1x1024xf32, #tpu.memory_space<vmem>>, vector<1x1024xf32>
    %30 = vector.broadcast %29 : vector<1x1024xf32> to vector<16x1024xf32>
    %31 = arith.mulf %28, %30 : vector<16x1024xf32>
    %c0_26 = arith.constant 0 : index
    %c0_27 = arith.constant 0 : index
    %32 = vector.load %arg9[%c0_26, %c0_27] : memref<1x1024xf32, #tpu.memory_space<vmem>>, vector<1x1024xf32>
    %33 = vector.broadcast %32 : vector<1x1024xf32> to vector<16x1024xf32>
    %34 = arith.addf %31, %33 : vector<16x1024xf32>
    %cst_28 = arith.constant 0.000000e+00 : f32
    %35 = vector.broadcast %cst_28 : f32 to vector<16x1024xf32>
    %36 = arith.maximumf %34, %35 : vector<16x1024xf32>
    %37 = arith.truncf %36 : vector<16x1024xf32> to vector<16x1024xbf16>
    %c0_29 = arith.constant 0 : index
    %c0_30 = arith.constant 0 : index
    %38 = vector.load %arg10[%c0_29, %c0_30] : memref<1024x256xi8, #tpu.memory_space<vmem>>, vector<1024x256xi8>
    %39 = arith.sitofp %38 : vector<1024x256xi8> to vector<1024x256xbf16>
    %cst_31 = arith.constant dense<0.000000e+00> : vector<16x256xf32>
    %40 = tpu.matmul %37, %39, %cst_31 {dimension_numbers = #tpu.dot_dimension_numbers<[1], [0], [0], [1], [0, 0, 1, 1], [], []>} : vector<16x1024xbf16>, vector<1024x256xbf16>, vector<16x256xf32> -> vector<16x256xf32>
    %c0_32 = arith.constant 0 : index
    %c0_33 = arith.constant 0 : index
    %41 = vector.load %arg11[%c0_32, %c0_33] : memref<1x256xf32, #tpu.memory_space<vmem>>, vector<1x256xf32>
    %42 = vector.broadcast %41 : vector<1x256xf32> to vector<16x256xf32>
    %43 = arith.mulf %40, %42 : vector<16x256xf32>
    %c0_34 = arith.constant 0 : index
    %c0_35 = arith.constant 0 : index
    %44 = vector.load %arg12[%c0_34, %c0_35] : memref<1x256xf32, #tpu.memory_space<vmem>>, vector<1x256xf32>
    %45 = vector.broadcast %44 : vector<1x256xf32> to vector<16x256xf32>
    %46 = arith.addf %43, %45 : vector<16x256xf32>
    %47 = arith.truncf %46 : vector<16x256xf32> to vector<16x256xbf16>
    %c0_36 = arith.constant 0 : index
    %c0_37 = arith.constant 0 : index
    %48 = vector.load %arg13[%c0_36, %c0_37] : memref<16x256xbf16, #tpu.memory_space<vmem>>, vector<16x256xbf16>
    tpu.vector_store %arg13[%c0_36, %c0_37], %47 {strides = array<i32>} : memref<16x256xbf16, #tpu.memory_space<vmem>>, vector<16x256xbf16>,
    return
  }
  func.func @transform_0(%arg0: i32) -> (i32, i32) {
    %c0_i32 = arith.constant 0 : i32
    %c0_i32_0 = arith.constant 0 : i32
    return %arg0, %c0_i32 : i32, i32
  }
  func.func @transform_1(%arg0: i32) -> (i32, i32) {
    %c0_i32 = arith.constant 0 : i32
    %c0_i32_0 = arith.constant 0 : i32
    %c0_i32_1 = arith.constant 0 : i32
    return %c0_i32, %c0_i32_0 : i32, i32
  }
  func.func @transform_2(%arg0: i32) -> (i32, i32) {
    %c0_i32 = arith.constant 0 : i32
    %c0_i32_0 = arith.constant 0 : i32
    %c0_i32_1 = arith.constant 0 : i32
    return %c0_i32, %c0_i32_0 : i32, i32
  }
  func.func @transform_3(%arg0: i32) -> (i32, i32) {
    %c0_i32 = arith.constant 0 : i32
    %c0_i32_0 = arith.constant 0 : i32
    %c0_i32_1 = arith.constant 0 : i32
    return %c0_i32, %c0_i32_0 : i32, i32
  }
  func.func @transform_4(%arg0: i32) -> (i32, i32) {
    %c0_i32 = arith.constant 0 : i32
    %c0_i32_0 = arith.constant 0 : i32
    %c0_i32_1 = arith.constant 0 : i32
    return %c0_i32, %c0_i32_0 : i32, i32
  }
  func.func @transform_5(%arg0: i32) -> (i32, i32) {
    %c0_i32 = arith.constant 0 : i32
    %c0_i32_0 = arith.constant 0 : i32
    %c0_i32_1 = arith.constant 0 : i32
    return %c0_i32, %c0_i32_0 : i32, i32
  }
  func.func @transform_6(%arg0: i32) -> (i32, i32) {
    %c0_i32 = arith.constant 0 : i32
    %c0_i32_0 = arith.constant 0 : i32
    %c0_i32_1 = arith.constant 0 : i32
    return %c0_i32, %c0_i32_0 : i32, i32
  }
  func.func @transform_7(%arg0: i32) -> (i32, i32) {
    %c0_i32 = arith.constant 0 : i32
    %c0_i32_0 = arith.constant 0 : i32
    %c0_i32_1 = arith.constant 0 : i32
    return %c0_i32, %c0_i32_0 : i32, i32
  }
  func.func @transform_8(%arg0: i32) -> (i32, i32) {
    %c0_i32 = arith.constant 0 : i32
    %c0_i32_0 = arith.constant 0 : i32
    %c0_i32_1 = arith.constant 0 : i32
    return %c0_i32, %c0_i32_0 : i32, i32
  }
  func.func @transform_9(%arg0: i32) -> (i32, i32) {
    %c0_i32 = arith.constant 0 : i32
    %c0_i32_0 = arith.constant 0 : i32
    %c0_i32_1 = arith.constant 0 : i32
    return %c0_i32, %c0_i32_0 : i32, i32
  }
  func.func @transform_10(%arg0: i32) -> (i32, i32) {
    %c0_i32 = arith.constant 0 : i32
    %c0_i32_0 = arith.constant 0 : i32
    %c0_i32_1 = arith.constant 0 : i32
    return %c0_i32, %c0_i32_0 : i32, i32
  }
  func.func @transform_11(%arg0: i32) -> (i32, i32) {
    %c0_i32 = arith.constant 0 : i32
    %c0_i32_0 = arith.constant 0 : i32
    %c0_i32_1 = arith.constant 0 : i32
    return %c0_i32, %c0_i32_0 : i32, i32
  }
  func.func @transform_12(%arg0: i32) -> (i32, i32) {
    %c0_i32 = arith.constant 0 : i32
    %c0_i32_0 = arith.constant 0 : i32
    return %arg0, %c0_i32 : i32, i32
  }
}

</mosaic_0001>

<bundles_post_ra>
// kernel: encoder_forward.1
= control target key start
LH: loop header
LB: loop body
LE: loop exit
PB: predicated region body
PF: predicated region fallthrough
CT: control target
= control target key end

     0   :  { %17 = vsyncpa [#allocation4], 0  ;;  %s2591_s0 = inlined_call_operand.vmem [shape: f32[16,121], index: 0, kind: input, shape index: {}]   ;;  %s2592_s1 = inlined_call_operand.hbm [shape: bf16[128,512], index: 1, kind: input, shape index: {}]   ;;  %s2593_s2 = inlined_call_operand.vmem [shape: f32[1,512], index: 2, kind: input, shape index: {}]   ;;  %s2594_s3 = inlined_call_operand.hbm [shape: s8[512,512], index: 3, kind: input, shape index: {}]   ;;  %s2595_s4 = inlined_call_operand.vmem [shape: f32[1,512], index: 4, kind: input, shape index: {}]   ;;  %s2596_s5 = inlined_call_operand.vmem [shape: f32[1,512], index: 5, kind: input, shape index: {}]   ;;  %s2597_s6 = inlined_call_operand.hbm [shape: s8[512,1024], index: 6, kind: input, shape index: {}]   ;;  %s2598_s7 = inlined_call_operand.vmem [shape: f32[1,1024], index: 7, kind: input, shape index: {}]   ;;  %s2599_s8 = inlined_call_operand.vmem [shape: f32[1,1024], index: 8, kind: input, shape index: {}]   ;;  %s2600_s9 = inlined_call_operand.hbm [shape: s8[1024,256], index: 9, kind: input, shape index: {}]   ;;  %s2601_s10 = inlined_call_operand.vmem [shape: f32[1,256], index: 10, kind: input, shape index: {}]   ;;  %s2602_s11 = inlined_call_operand.vmem [shape: f32[1,256], index: 11, kind: input, shape index: {}]   ;;  %s2603_s12 = inlined_call_operand.vmem [shape: bf16[16,256], index: 12, kind: output, shape index: {}]  }
   0x1   :  { %18 = vsyncpa [#allocation6], 0 }
   0x2   :  { %19 = vsyncpa [#allocation9], 0  ;;  %s2340_s21 = smov [#allocation5]  }
   0x3   :  { %s41_s22 = sshll.u32 %s2340_s21, 4  ;;  %s42_s22 = int_to_ptr.vmem [resolvable:$true] %s41_s22 }
   0x4   :  { %s2262_s23 = scalar_lea.vmem %s42_s22, 8192  ;;  %p2267_p1 = scmp.lt.s32.totalorder %s42_s22, %s42_s22 }
   0x5   :  { %p2263_p0 = scmp.ne.s32.totalorder %s42_s22, %s2262_s23  ;;  %p2268_p2 = scmp.lt.s32.totalorder %s2262_s23, %s2262_s23 }
   0x7   :  { %p2269_p3 = por %p2268_p2, %p2267_p1 }
   0x9   :  { %p2270_p4 = pnand %p2269_p3, %p2263_p0 }
   0xb   :  { %2273 = shalt.err (!%p2270_p4)
}
   0xc   :  { %s2341_s24 = smov 512   ;;  %s2342_s25 = smov 32  }
   0xd   :  { %47 = dma.hbm_to_vmem [thread:$0]  %s2594_s3, 8192, %s42_s22, [#allocation6], %s2341_s24, %s2341_s24, %s2342_s25  }
   0xe   :  { %s2343_s28 = smov [#allocation3]  }
   0xf   :  { %s27_s29 = sshll.u32 %s2343_s28, 4  ;;  %s28_s29 = int_to_ptr.vmem [resolvable:$true] %s27_s29 }
  0x10   :  { %s2282_s30 = scalar_lea.vmem %s28_s29, 4096  ;;  %p2287_p6 = scmp.lt.s32.totalorder %s28_s29, %s28_s29 }
  0x11   :  { %p2283_p5 = scmp.ne.s32.totalorder %s28_s29, %s2282_s30  ;;  %p2288_p7 = scmp.lt.s32.totalorder %s2282_s30, %s2282_s30 }
  0x13   :  { %p2289_p8 = por %p2288_p7, %p2287_p6 }
  0x15   :  { %p2290_p9 = pnand %p2289_p8, %p2283_p5 }
  0x17   :  { %2293 = shalt.err (!%p2290_p9)
}
  0x18   :  { %s2344_s13 = smov 256   ;;  %s2345_s14 = smov 16  }
  0x19   :  { %33 = dma.hbm_to_vmem [thread:$0]  %s2592_s1, 4096, %s28_s29, [#allocation4], %s2344_s13, %s2344_s13, %s2345_s14  }
  0x1a   :  { %s2346_s17 = smov [#allocation7]  }
  0x1b   :  { %s57_s18 = sshll.u32 %s2346_s17, 4  ;;  %s58_s18 = int_to_ptr.vmem [resolvable:$true] %s57_s18 }
  0x1c   :  { %s2302_s3 = scalar_lea.vmem %s58_s18, 16384  ;;  %p2307_p11 = scmp.lt.s32.totalorder %s58_s18, %s58_s18 }
  0x1d   :  { %p2303_p10 = scmp.ne.s32.totalorder %s58_s18, %s2302_s3  ;;  %p2308_p12 = scmp.lt.s32.totalorder %s2302_s3, %s2302_s3 }
  0x1f   :  { %p2309_p13 = por %p2308_p12, %p2307_p11 }
  0x21   :  { %p2310_p0 = pnand %p2309_p13, %p2303_p10 }
  0x23   :  { %2313 = shalt.err (!%p2310_p0)
}
  0x24   :  { %s2347_s19 = smov 1024   ;;  %s2348_s20 = smov 64  }
  0x25   :  { %63 = dma.hbm_to_vmem [thread:$0]  %s2597_s6, 16384, %s58_s18, [#allocation6], %s2347_s19, %s2347_s19, %s2348_s20  }
  0x26   :  { %s2349_s23 = smov [#allocation8]  }
  0x27   :  { %s73_s24 = sshll.u32 %s2349_s23, 4  ;;  %s74_s24 = int_to_ptr.vmem [resolvable:$true] %s73_s24 }
  0x28   :  { %s2322_s1 = scalar_lea.vmem %s74_s24, 8192  ;;  %p2327_p2 = scmp.lt.s32.totalorder %s74_s24, %s74_s24 }
  0x29   :  { %p2323_p1 = scmp.ne.s32.totalorder %s74_s24, %s2322_s1  ;;  %p2328_p3 = scmp.lt.s32.totalorder %s2322_s1, %s2322_s1 }
  0x2b   :  { %p2329_p4 = por %p2328_p3, %p2327_p2 }
  0x2d   :  { %p2330_p5 = pnand %p2329_p4, %p2323_p1 }
  0x2f   :  { %2333 = shalt.err (!%p2330_p5)
}
  0x30   :  { %79 = dma.hbm_to_vmem [thread:$0]  %s2600_s9, 8192, %s74_s24, [#allocation9], %s2344_s13, %s2344_s13, %s2345_s14  }
  0x31   :  { %2334 = dma.done.wait [#allocation4], 4096  }
  0x32   :  { %2335 = vsyncadd [#allocation4], 4294963200 }
  0x33   :  { %2336 = dma.done.wait [#allocation6], 24576  }
  0x34   :  { %2337 = vsyncadd [#allocation6], 4294942720 }
  0x35   :  { %2338 = dma.done.wait [#allocation9], 8192  }
  0x36   :  { %2339 = vsyncadd [#allocation9], 4294959104  ;;  %v2350_v0 = vmov 0   ;;  %v2205_v1 = vld [vmem:[#allocation3 + $0xe4] ss:$16 sps:$4 sm:$0xff]   ;;  %v99_v27 = vld [vmem:[%s2591_s0] sm:$0xff] }
  0x37   :  { %97 = vst [vmem:[#allocation2] sm:$0xf] %v2350_v0  ;;  %98 = vst [vmem:[#allocation2 + $0x4] sm:$0xf] %v2350_v0  ;;  %366 = vmatprep.mubr.bf16.mxu0 %v2350_v0  ;;  %409 = vmatprep.mubr.bf16.mxu1 %v2350_v0  ;;  %v2207_v2 = vld [vmem:[#allocation3 + $0xec] ss:$16 sps:$4 sm:$0xff]   ;;  %v2190_v29 = vpack.c.bf16 %v99_v27, %v99_v27 }
  0x38   :  { %334 = vmatprep.subr.bf16.mxu0 %v2205_v1  ;;  %v2209_v3 = vld [vmem:[#allocation3 + $0xe0] ss:$16 sps:$4 sm:$0xff]   ;;  %v2210_v4 = vld [vmem:[#allocation3 + $0xe8] ss:$16 sps:$4 sm:$0xff]   ;;  %377 = vmatprep.subr.bf16.mxu1 %v2207_v2  ;;  %v2211_v5 = vld [vmem:[#allocation3 + $0xc4] ss:$16 sps:$4 sm:$0xff]  }
  0x39   :  { %335 = vmatpush1.bf16.msra.mxu0 %v2209_v3  ;;  %378 = vmatpush1.bf16.msra.mxu1 %v2210_v4  ;;  %v2213_v6 = vld [vmem:[#allocation3 + $0xcc] ss:$16 sps:$4 sm:$0xff]   ;;  %v2215_v7 = vld [vmem:[#allocation3 + $0xc0] ss:$16 sps:$4 sm:$0xff]   ;;  %v2216_v8 = vld [vmem:[#allocation3 + $0xc8] ss:$16 sps:$4 sm:$0xff]  }
  0x3a   :  { %336 = vmatprep.subr.bf16.mxu0 %v2211_v5  ;;  %379 = vmatprep.subr.bf16.mxu1 %v2213_v6  ;;  %v2217_v9 = vld [vmem:[#allocation3 + $0xa4] ss:$16 sps:$4 sm:$0xff]   ;;  %v2219_v10 = vld [vmem:[#allocation3 + $0xac] ss:$16 sps:$4 sm:$0xff]   ;;  %v2221_v11 = vld [vmem:[#allocation3 + $0xa0] ss:$16 sps:$4 sm:$0xff]  }
  0x3b   :  { %v2222_v12 = vld [vmem:[#allocation3 + $0xa8] ss:$16 sps:$4 sm:$0xff]   ;;  %v2223_v13 = vld [vmem:[#allocation3 + $0x84] ss:$16 sps:$4 sm:$0xff]   ;;  %v2225_v14 = vld [vmem:[#allocation3 + $0x8c] ss:$16 sps:$4 sm:$0xff]  }
  0x3c   :  { %v2227_v15 = vld [vmem:[#allocation3 + $0x80] ss:$16 sps:$4 sm:$0xff]   ;;  %v2228_v16 = vld [vmem:[#allocation3 + $0x88] ss:$16 sps:$4 sm:$0xff]   ;;  %v2229_v17 = vld [vmem:[#allocation3 + $0x64] ss:$16 sps:$4 sm:$0xff]  }
  0x3d   :  { %337 = vmatpush1.bf16.msra.mxu0 %v2215_v7  ;;  %380 = vmatpush1.bf16.msra.mxu1 %v2216_v8  ;;  %v2231_v18 = vld [vmem:[#allocation3 + $0x6c] ss:$16 sps:$4 sm:$0xff]   ;;  %v2233_v19 = vld [vmem:[#allocation3 + $0x60] ss:$16 sps:$4 sm:$0xff]   ;;  %v2234_v20 = vld [vmem:[#allocation3 + $0x68] ss:$16 sps:$4 sm:$0xff]  }
  0x3e   :  { %338 = vmatprep.subr.bf16.mxu0 %v2217_v9  ;;  %381 = vmatprep.subr.bf16.mxu1 %v2219_v10  ;;  %v2235_v21 = vld [vmem:[#allocation3 + $0x44] ss:$16 sps:$4 sm:$0xff]   ;;  %v2237_v22 = vld [vmem:[#allocation3 + $0x4c] ss:$16 sps:$4 sm:$0xff]   ;;  %v2239_v23 = vld [vmem:[#allocation3 + $0x40] ss:$16 sps:$4 sm:$0xff]  }
  0x3f   :  { %v2240_v24 = vld [vmem:[#allocation3 + $0x48] ss:$16 sps:$4 sm:$0xff]   ;;  %v2241_v25 = vld [vmem:[#allocation3 + $0x24] ss:$16 sps:$4 sm:$0xff]   ;;  %v2243_v26 = vld [vmem:[#allocation3 + $0x2c] ss:$16 sps:$4 sm:$0xff]  }
  0x40   :  { %v100_v28 = vld [vmem:[%s2591_s0 + $0x8] sm:$0xff]  ;;  %vm109_vm0 = vcmask 986112   ;;  %v2246_v32 = vld [vmem:[#allocation3 + $0x28] ss:$16 sps:$4 sm:$0xff]   ;;  %v2249_v34 = vld [vmem:[#allocation3 + $0xc] ss:$16 sps:$4 sm:$0xff]  }
  0x41   :  { %339 = vmatpush1.bf16.msra.mxu0 %v2221_v11  ;;  %382 = vmatpush1.bf16.msra.mxu1 %v2222_v12  ;;  %v2191_v30 = vpack.c.bf16 %v100_v28, %v100_v28  ;;  %v2245_v31 = vld [vmem:[#allocation3 + $0x20] ss:$16 sps:$4 sm:$0xff]   ;;  %110 = vst.msk [vmem:[#allocation2] sm:$0xf] %vm109_vm0, %v2190_v29  ;;  %v2247_v33 = vld [vmem:[#allocation3 + $0x4] ss:$16 sps:$4 sm:$0xff]  }
  0x42   :  { %340 = vmatprep.subr.bf16.mxu0 %v2223_v13  ;;  %383 = vmatprep.subr.bf16.mxu1 %v2225_v14  ;;  %v445_v35 = vld [vmem:[#allocation5 + $0x68] sm:$0xff]  ;;  %v2251_v37 = vld [vmem:[#allocation3] ss:$16 sps:$4 sm:$0xff]  }
  0x43   :  { %111 = vst.msk [vmem:[#allocation2 + $0x4] sm:$0xf] %vm109_vm0, %v2191_v30  ;;  %v477_v36 = vld [vmem:[#allocation5 + $0x168] sm:$0xff]  ;;  %v525_v39 = vunpack.c.h.s8.bf16 %v445_v35  ;;  %v444_v41 = vld [vmem:[#allocation5 + $0x60] sm:$0xff]  ;;  %v521_v46 = vunpack.c.l.s8.bf16 %v445_v35 }
  0x44   :  { %v2252_v38 = vld [vmem:[#allocation3 + $0x8] ss:$16 sps:$4 sm:$0xff]   ;;  %v589_v40 = vunpack.c.h.s8.bf16 %v477_v36  ;;  %v476_v42 = vld [vmem:[#allocation5 + $0x160] sm:$0xff]  ;;  %v524_v44 = vunpack.c.h.s8.bf16 %v444_v41  ;;  %v585_v47 = vunpack.c.l.s8.bf16 %v477_v36  ;;  %v520_v50 = vunpack.c.l.s8.bf16 %v444_v41 }
  0x45   :  { %341 = vmatpush1.bf16.msra.mxu0 %v2227_v15  ;;  %384 = vmatpush1.bf16.msra.mxu1 %v2228_v16  ;;  %v588_v45 = vunpack.c.h.s8.bf16 %v476_v42  ;;  %v441_v48 = vld [vmem:[#allocation5 + $0x48] sm:$0xff]  ;;  %v584_v51 = vunpack.c.l.s8.bf16 %v476_v42  ;;  %v440_v54 = vld [vmem:[#allocation5 + $0x40] sm:$0xff] }
  0x46   :  { %342 = vmatprep.subr.bf16.mxu0 %v2229_v17  ;;  %385 = vmatprep.subr.bf16.mxu1 %v2231_v18  ;;  %v473_v49 = vld [vmem:[#allocation5 + $0x148] sm:$0xff]  ;;  %v517_v52 = vunpack.c.h.s8.bf16 %v441_v48  ;;  %v472_v55 = vld [vmem:[#allocation5 + $0x140] sm:$0xff]  ;;  %v516_v56 = vunpack.c.h.s8.bf16 %v440_v54  ;;  %v513_v58 = vunpack.c.l.s8.bf16 %v441_v48  ;;  %v512_v62 = vunpack.c.l.s8.bf16 %v440_v54 }
  0x47   :  { %v581_v53 = vunpack.c.h.s8.bf16 %v473_v49  ;;  %v580_v57 = vunpack.c.h.s8.bf16 %v472_v55  ;;  %v577_v59 = vunpack.c.l.s8.bf16 %v473_v49  ;;  %v437_v60 = vld [vmem:[#allocation5 + $0x28] sm:$0xff]  ;;  %v576_v63 = vunpack.c.l.s8.bf16 %v472_v55  ;;  %v436_v2 = vld [vmem:[#allocation5 + $0x20] sm:$0xff] }
  0x48   :  { %v469_v61 = vld [vmem:[#allocation5 + $0x128] sm:$0xff]  ;;  %v509_v0 = vunpack.c.h.s8.bf16 %v437_v60  ;;  %v468_v3 = vld [vmem:[#allocation5 + $0x120] sm:$0xff]  ;;  %v508_v4 = vunpack.c.h.s8.bf16 %v436_v2  ;;  %v505_v6 = vunpack.c.l.s8.bf16 %v437_v60  ;;  %v504_v10 = vunpack.c.l.s8.bf16 %v436_v2 }
  0x49   :  { %343 = vmatpush1.bf16.msra.mxu0 %v2233_v19  ;;  %386 = vmatpush1.bf16.msra.mxu1 %v2234_v20  ;;  %v573_v1 = vunpack.c.h.s8.bf16 %v469_v61  ;;  %v572_v5 = vunpack.c.h.s8.bf16 %v468_v3  ;;  %v569_v7 = vunpack.c.l.s8.bf16 %v469_v61  ;;  %v433_v8 = vld [vmem:[#allocation5 + $0x8] sm:$0xff]  ;;  %v568_v11 = vunpack.c.l.s8.bf16 %v468_v3  ;;  %v432_v14 = vld [vmem:[#allocation5] sm:$0xff] }
  0x4a   :  { %344 = vmatprep.subr.bf16.mxu0 %v2235_v21  ;;  %387 = vmatprep.subr.bf16.mxu1 %v2237_v22  ;;  %v2253_v43 = vld [vmem:[#allocation2] sm:$0xff]   ;;  %v465_v9 = vld [vmem:[#allocation5 + $0x108] sm:$0xff]  ;;  %v501_v12 = vunpack.c.h.s8.bf16 %v433_v8  ;;  %v464_v15 = vld [vmem:[#allocation5 + $0x100] sm:$0xff]  ;;  %v500_v16 = vunpack.c.h.s8.bf16 %v432_v14  ;;  %v497_v18 = vunpack.c.l.s8.bf16 %v433_v8  ;;  %v496_v22 = vunpack.c.l.s8.bf16 %v432_v14 }
  0x4b   :  { %v565_v13 = vunpack.c.h.s8.bf16 %v465_v9  ;;  %v564_v17 = vunpack.c.h.s8.bf16 %v464_v15  ;;  %v561_v19 = vunpack.c.l.s8.bf16 %v465_v9  ;;  %v461_v20 = vld [vmem:[#allocation5 + $0xe8] sm:$0xff]  ;;  %v492_v27 = vld [vmem:[#allocation5 + $0x1e0] sm:$0xff] }
  0x4c   :  { %v493_v21 = vld [vmem:[#allocation5 + $0x1e8] sm:$0xff]  ;;  %v620_v29 = vunpack.c.h.s8.bf16 %v492_v27  ;;  %v553_v30 = vunpack.c.l.s8.bf16 %v461_v20  ;;  %v616_v35 = vunpack.c.l.s8.bf16 %v492_v27 }
  0x4d   :  { %345 = vmatpush1.bf16.msra.mxu0 %v2239_v23  ;;  %388 = vmatpush1.bf16.msra.mxu1 %v2240_v24  ;;  %v560_v23 = vunpack.c.l.s8.bf16 %v464_v15  ;;  %v557_v24 = vunpack.c.h.s8.bf16 %v461_v20 }
  0x4e   :  { %346 = vmatprep.subr.bf16.mxu0 %v2241_v25  ;;  %389 = vmatprep.subr.bf16.mxu1 %v2243_v26  ;;  %v621_v25 = vunpack.c.h.s8.bf16 %v493_v21  ;;  %v460_v26 = vld [vmem:[#allocation5 + $0xe0] sm:$0xff] }
  0x4f   :  { %v556_v28 = vunpack.c.h.s8.bf16 %v460_v26 }
  0x51   :  { %347 = vmatpush1.bf16.msra.mxu0 %v2245_v31  ;;  %390 = vmatpush1.bf16.msra.mxu1 %v2246_v32  ;;  %v617_v31 = vunpack.c.l.s8.bf16 %v493_v21  ;;  %v457_v32 = vld [vmem:[#allocation5 + $0xc8] sm:$0xff] }
  0x52   :  { %348 = vmatprep.subr.bf16.mxu0 %v2247_v33  ;;  %391 = vmatprep.subr.bf16.mxu1 %v2249_v34  ;;  %v489_v33 = vld [vmem:[#allocation5 + $0x1c8] sm:$0xff]  ;;  %v552_v34 = vunpack.c.l.s8.bf16 %v460_v26  ;;  %v549_v36 = vunpack.c.h.s8.bf16 %v457_v32  ;;  %v545_v42 = vunpack.c.l.s8.bf16 %v457_v32 }
  0x55   :  { %349 = vmatpush1.bf16.msra.mxu0 %v2251_v37  ;;  %392 = vmatpush1.bf16.msra.mxu1 %v2252_v38  ;;  %v613_v37 = vunpack.c.h.s8.bf16 %v489_v33  ;;  %v456_v38 = vld [vmem:[#allocation5 + $0xc0] sm:$0xff] }
  0x56   :  { %624 = vmatprep.subr.bf16.mxu0 %v525_v39  ;;  %667 = vmatprep.subr.bf16.mxu1 %v589_v40  ;;  %v488_v39 = vld [vmem:[#allocation5 + $0x1c0] sm:$0xff]  ;;  %v548_v40 = vunpack.c.h.s8.bf16 %v456_v38 }
  0x57   :  { %v612_v41 = vunpack.c.h.s8.bf16 %v488_v39 }
  0x58   :  { %367 = vmatmul.mubr.bf16.vlgmr.msra.gmra.mxu0 %v2253_v43  ;;  %410 = vmatmul.mubr.bf16.vlgmr.msra.gmra.mxu1 %v2253_v43  ;;  %v609_v43 = vunpack.c.l.s8.bf16 %v489_v33 }
  0x59   :  { %625 = vmatpush1.bf16.msra.mxu0 %v524_v44  ;;  %668 = vmatpush1.bf16.msra.mxu1 %v588_v45  ;;  %v453_v44 = vld [vmem:[#allocation5 + $0xa8] sm:$0xff] }
  0x5a   :  { %626 = vmatprep.subr.bf16.mxu0 %v521_v46  ;;  %669 = vmatprep.subr.bf16.mxu1 %v585_v47  ;;  %v485_v45 = vld [vmem:[#allocation5 + $0x1a8] sm:$0xff]  ;;  %v544_v46 = vunpack.c.l.s8.bf16 %v456_v38  ;;  %v608_v47 = vunpack.c.l.s8.bf16 %v488_v39  ;;  %v541_v48 = vunpack.c.h.s8.bf16 %v453_v44  ;;  %v537_v54 = vunpack.c.l.s8.bf16 %v453_v44  ;;  %v446_v39 = vld [vmem:[#allocation5 + $0x70] sm:$0xff] }
  0x5b   :  { %v605_v49 = vunpack.c.h.s8.bf16 %v485_v45  ;;  %v601_v55 = vunpack.c.l.s8.bf16 %v485_v45 }
  0x5d   :  { %627 = vmatpush1.bf16.msra.mxu0 %v520_v50  ;;  %670 = vmatpush1.bf16.msra.mxu1 %v584_v51  ;;  %v452_v50 = vld [vmem:[#allocation5 + $0xa0] sm:$0xff] }
  0x5e   :  { %628 = vmatprep.subr.bf16.mxu0 %v517_v52  ;;  %671 = vmatprep.subr.bf16.mxu1 %v581_v53  ;;  %v484_v51 = vld [vmem:[#allocation5 + $0x1a0] sm:$0xff]  ;;  %v540_v52 = vunpack.c.h.s8.bf16 %v452_v50 }
  0x5f   :  { %v604_v53 = vunpack.c.h.s8.bf16 %v484_v51 }
  0x61   :  { %629 = vmatpush1.bf16.msra.mxu0 %v516_v56  ;;  %672 = vmatpush1.bf16.msra.mxu1 %v580_v57  ;;  %v536_v56 = vunpack.c.l.s8.bf16 %v452_v50  ;;  %v600_v57 = vunpack.c.l.s8.bf16 %v484_v51 }
  0x62   :  { %630 = vmatprep.subr.bf16.mxu0 %v513_v58  ;;  %673 = vmatprep.subr.bf16.mxu1 %v577_v59  ;;  %v449_v58 = vld [vmem:[#allocation5 + $0x88] sm:$0xff] }
  0x63   :  { %v481_v59 = vld [vmem:[#allocation5 + $0x188] sm:$0xff]  ;;  %v533_v60 = vunpack.c.h.s8.bf16 %v449_v58  ;;  %v529_v2 = vunpack.c.l.s8.bf16 %v449_v58 }
  0x64   :  { %v597_v61 = vunpack.c.h.s8.bf16 %v481_v59  ;;  %v593_v3 = vunpack.c.l.s8.bf16 %v481_v59 }
  0x65   :  { %631 = vmatpush1.bf16.msra.mxu0 %v512_v62  ;;  %674 = vmatpush1.bf16.msra.mxu1 %v576_v63  ;;  %v448_v62 = vld [vmem:[#allocation5 + $0x80] sm:$0xff] }
  0x66   :  { %632 = vmatprep.subr.bf16.mxu0 %v509_v0  ;;  %675 = vmatprep.subr.bf16.mxu1 %v573_v1  ;;  %v480_v63 = vld [vmem:[#allocation5 + $0x180] sm:$0xff]  ;;  %v532_v0 = vunpack.c.h.s8.bf16 %v448_v62 }
  0x67   :  { %v596_v1 = vunpack.c.h.s8.bf16 %v480_v63 }
  0x69   :  { %633 = vmatpush1.bf16.msra.mxu0 %v508_v4  ;;  %676 = vmatpush1.bf16.msra.mxu1 %v572_v5  ;;  %v528_v4 = vunpack.c.l.s8.bf16 %v448_v62  ;;  %v592_v5 = vunpack.c.l.s8.bf16 %v480_v63  ;;  %v474_v62 = vld [vmem:[#allocation5 + $0x150] sm:$0xff] }
  0x6a   :  { %634 = vmatprep.subr.bf16.mxu0 %v505_v6  ;;  %677 = vmatprep.subr.bf16.mxu1 %v569_v7  ;;  %v2434_v6 = vld [vmem:[#allocation5 + $0x78] sm:$0xff] }
  0x6b   :  { %v2436_v7 = vld [vmem:[#allocation5 + $0x178] sm:$0xff]  ;;  %v527_v8 = vunpack.c.h.s8.bf16 %v2434_v6 }
  0x6c   :  { %v591_v9 = vunpack.c.h.s8.bf16 %v2436_v7 }
  0x6d   :  { %635 = vmatpush1.bf16.msra.mxu0 %v504_v10  ;;  %678 = vmatpush1.bf16.msra.mxu1 %v568_v11  ;;  %v148_v10 = vlaneseq }
  0x6e   :  { %636 = vmatprep.subr.bf16.mxu0 %v501_v12  ;;  %679 = vmatprep.subr.bf16.mxu1 %v565_v13 }
  0x6f   :  { %v2440_v11 = vshrl.u32 %v148_v10, 7  ;;  %v470_v10 = vld [vmem:[#allocation5 + $0x130] sm:$0xff] }
  0x71   :  { %637 = vmatpush1.bf16.msra.mxu0 %v500_v16  ;;  %680 = vmatpush1.bf16.msra.mxu1 %v564_v17  ;;  %v2443_v12 = vsub.s32 1, %v2440_v11  ;;  %v2446_v13 = vsub.s32 3, %v2440_v11  ;;  %v2449_v14 = vsub.s32 0, %v2440_v11  ;;  %v2452_v15 = vsub.s32 2, %v2440_v11  ;;  %v146_v16 = vld [vmem:[%s2593_s2] sm:$0xf] }
  0x72   :  { %638 = vmatprep.subr.bf16.mxu0 %v497_v18  ;;  %681 = vmatprep.subr.bf16.mxu1 %v561_v19 }
  0x73   :  { %v155_v19 = vrot.slane %v146_v16, %v2443_v12  ;;  %v163_v20 = vrot.slane %v146_v16, %v2446_v13  ;;  %v151_v21 = vrot.slane %v146_v16, %v2449_v14 }
  0x75   :  { %639 = vmatpush1.bf16.msra.mxu0 %v496_v22  ;;  %682 = vmatpush1.bf16.msra.mxu1 %v560_v23  ;;  %v159_v22 = vrot.slane %v146_v16, %v2452_v15 }
  0x76   :  { %640 = vmatprep.subr.bf16.mxu0 %v557_v24  ;;  %683 = vmatprep.subr.bf16.mxu1 %v621_v25 }
  0x79   :  { %641 = vmatpush2.bf16.msra.mxu0 %v556_v28  ;;  %684 = vmatpush2.bf16.msra.mxu1 %v620_v29 }
  0x7a   :  { %642 = vmatprep.subr.bf16.mxu0 %v553_v30  ;;  %685 = vmatprep.subr.bf16.mxu1 %v617_v31 }
  0x7d   :  { %643 = vmatpush2.bf16.msra.mxu0 %v552_v34  ;;  %686 = vmatpush2.bf16.msra.mxu1 %v616_v35 }
  0x7e   :  { %644 = vmatprep.subr.bf16.mxu0 %v549_v36  ;;  %687 = vmatprep.subr.bf16.mxu1 %v613_v37 }
  0x81   :  { %645 = vmatpush2.bf16.msra.mxu0 %v548_v40  ;;  %688 = vmatpush2.bf16.msra.mxu1 %v612_v41  ;;  %v478_v40 = vld [vmem:[#allocation5 + $0x170] sm:$0xff] }
  0x82   :  { %646 = vmatprep.subr.bf16.mxu0 %v545_v42  ;;  %689 = vmatprep.subr.bf16.mxu1 %v609_v43  ;;  %v590_v50 = vunpack.c.h.s8.bf16 %v478_v40  ;;  %v586_v58 = vunpack.c.l.s8.bf16 %v478_v40 }
  0x85   :  { %647 = vmatpush2.bf16.msra.mxu0 %v544_v46  ;;  %690 = vmatpush2.bf16.msra.mxu1 %v608_v47 }
  0x86   :  { %648 = vmatprep.subr.bf16.mxu0 %v541_v48  ;;  %691 = vmatprep.subr.bf16.mxu1 %v605_v49  ;;  %v526_v49 = vunpack.c.h.s8.bf16 %v446_v39 }
  0x89   :  { %649 = vmatpush2.bf16.msra.mxu0 %v540_v52  ;;  %692 = vmatpush2.bf16.msra.mxu1 %v604_v53  ;;  %v523_v53 = vunpack.c.l.s8.bf16 %v2434_v6  ;;  %v578_v6 = vunpack.c.l.s8.bf16 %v474_v62 }
  0x8a   :  { %650 = vmatprep.subr.bf16.mxu0 %v537_v54  ;;  %693 = vmatprep.subr.bf16.mxu1 %v601_v55  ;;  %v587_v54 = vunpack.c.l.s8.bf16 %v2436_v7  ;;  %v443_v55 = vld [vmem:[#allocation5 + $0x58] sm:$0xff] }
  0x8b   :  { %v519_v59 = vunpack.c.h.s8.bf16 %v443_v55 }
  0x8d   :  { %651 = vmatpush2.bf16.msra.mxu0 %v536_v56  ;;  %694 = vmatpush2.bf16.msra.mxu1 %v600_v57  ;;  %v475_v56 = vld [vmem:[#allocation5 + $0x158] sm:$0xff]  ;;  %v522_v57 = vunpack.c.l.s8.bf16 %v446_v39  ;;  %v494_v39 = vld [vmem:[#allocation5 + $0x1f0] sm:$0xff] }
  0x8e   :  { %652 = vmatprep.subr.bf16.mxu0 %v533_v60  ;;  %695 = vmatprep.subr.bf16.mxu1 %v597_v61  ;;  %v583_v60 = vunpack.c.h.s8.bf16 %v475_v56  ;;  %v442_v61 = vld [vmem:[#allocation5 + $0x50] sm:$0xff] }
  0x8f   :  { %v518_v63 = vunpack.c.h.s8.bf16 %v442_v61 }
  0x91   :  { %653 = vmatpush2.bf16.msra.mxu0 %v532_v0  ;;  %696 = vmatpush2.bf16.msra.mxu1 %v596_v1  ;;  %v582_v0 = vunpack.c.h.s8.bf16 %v474_v62  ;;  %v515_v1 = vunpack.c.l.s8.bf16 %v443_v55 }
  0x92   :  { %654 = vmatprep.subr.bf16.mxu0 %v529_v2  ;;  %697 = vmatprep.subr.bf16.mxu1 %v593_v3  ;;  %v579_v2 = vunpack.c.l.s8.bf16 %v475_v56  ;;  %v439_v3 = vld [vmem:[#allocation5 + $0x38] sm:$0xff] }
  0x93   :  { %v511_v7 = vunpack.c.h.s8.bf16 %v439_v3 }
  0x95   :  { %655 = vmatpush2.bf16.msra.mxu0 %v528_v4  ;;  %698 = vmatpush2.bf16.msra.mxu1 %v592_v5  ;;  %v471_v4 = vld [vmem:[#allocation5 + $0x138] sm:$0xff]  ;;  %v514_v5 = vunpack.c.l.s8.bf16 %v442_v61 }
  0x96   :  { %710 = vmatprep.subr.bf16.mxu0 %v527_v8  ;;  %753 = vmatprep.subr.bf16.mxu1 %v591_v9  ;;  %v575_v8 = vunpack.c.h.s8.bf16 %v471_v4  ;;  %v438_v9 = vld [vmem:[#allocation5 + $0x30] sm:$0xff] }
  0x97   :  { %v510_v16 = vunpack.c.h.s8.bf16 %v438_v9 }
 0x118   :  { %v368_v17 = vpop.f32.mrf.mxu0  ;;  %v411_v18 = vpop.f32.mrf.mxu1 }
 0x119   :  { %v369_v31 = vadd.f32 %v368_v17, %v151_v21  ;;  %v412_v32 = vadd.f32 %v411_v18, %v159_v22  ;;  %v574_v17 = vunpack.c.h.s8.bf16 %v470_v10  ;;  %v507_v18 = vunpack.c.l.s8.bf16 %v439_v3 }
 0x11a   :  { %v370_v23 = vpop.f32.mrf.mxu0  ;;  %v413_v24 = vpop.f32.mrf.mxu1 }
 0x11b   :  { %v371_v27 = vadd.f32 %v370_v23, %v155_v19  ;;  %v414_v28 = vadd.f32 %v413_v24, %v163_v20  ;;  %v420_v45 = vmax.f32 %v369_v31, 0.0  ;;  %v422_v46 = vmax.f32 %v412_v32, 0.0  ;;  %v463_v32 = vld [vmem:[#allocation5 + $0xf8] sm:$0xff] }
 0x11c   :  { %v372_v25 = vpop.f32.mrf.mxu0  ;;  %v415_v26 = vpop.f32.mrf.mxu1  ;;  %v570_v23 = vunpack.c.l.s8.bf16 %v470_v10 }
 0x11d   :  { %v373_v29 = vadd.f32 %v372_v25, %v151_v21  ;;  %v416_v30 = vadd.f32 %v415_v26, %v159_v22  ;;  %v421_v41 = vmax.f32 %v371_v27, 0.0  ;;  %v423_v42 = vmax.f32 %v414_v28, 0.0  ;;  %v467_v21 = vld [vmem:[#allocation5 + $0x118] sm:$0xff]  ;;  %v434_v26 = vld [vmem:[#allocation5 + $0x10] sm:$0xff] }
 0x11e   :  { %v374_v33 = vpop.f32.mrf.mxu0  ;;  %v417_v34 = vpop.f32.mrf.mxu1  ;;  %v506_v22 = vunpack.c.l.s8.bf16 %v438_v9  ;;  %v567_v25 = vunpack.c.h.s8.bf16 %v467_v21  ;;  %v466_v27 = vld [vmem:[#allocation5 + $0x110] sm:$0xff]  ;;  %v502_v28 = vunpack.c.h.s8.bf16 %v434_v26  ;;  %v563_v31 = vunpack.c.l.s8.bf16 %v467_v21 }
 0x11f   :  { %v375_v35 = vadd.f32 %v374_v33, %v155_v19  ;;  %v418_v36 = vadd.f32 %v417_v34, %v163_v20  ;;  %v424_v37 = vmax.f32 %v373_v29, 0.0  ;;  %v426_v38 = vmax.f32 %v416_v30, 0.0  ;;  %v435_v20 = vld [vmem:[#allocation5 + $0x18] sm:$0xff] }
 0x120   :  { %v571_v19 = vunpack.c.l.s8.bf16 %v471_v4  ;;  %v503_v24 = vunpack.c.h.s8.bf16 %v435_v20  ;;  %v566_v29 = vunpack.c.h.s8.bf16 %v466_v27  ;;  %v499_v30 = vunpack.c.l.s8.bf16 %v435_v20  ;;  %v495_v33 = vld [vmem:[#allocation5 + $0x1f8] sm:$0xff] }
 0x121   :  { %v425_v43 = vmax.f32 %v375_v35, 0.0  ;;  %v427_v44 = vmax.f32 %v418_v36, 0.0  ;;  %v2461_v51 = vpack.c.bf16 %v424_v37, %v420_v45  ;;  %v2463_v52 = vpack.c.bf16 %v426_v38, %v422_v46  ;;  %v462_v38 = vld [vmem:[#allocation5 + $0xf0] sm:$0xff]  ;;  %v491_v45 = vld [vmem:[#allocation5 + $0x1d8] sm:$0xff] }
 0x122   :  { %v498_v34 = vunpack.c.l.s8.bf16 %v434_v26  ;;  %v562_v35 = vunpack.c.l.s8.bf16 %v466_v27  ;;  %v559_v36 = vunpack.c.h.s8.bf16 %v463_v32  ;;  %v623_v37 = vunpack.c.h.s8.bf16 %v495_v33  ;;  %v892_v27 = vld [vmem:[#allocation7 + $0xc0] sm:$0xff] }
 0x123   :  { %v429_v47 = vpack.c.bf16 %v425_v43, %v421_v41  ;;  %v431_v48 = vpack.c.bf16 %v427_v44, %v423_v42  ;;  %v558_v40 = vunpack.c.h.s8.bf16 %v462_v38  ;;  %v622_v41 = vunpack.c.h.s8.bf16 %v494_v39  ;;  %v459_v44 = vld [vmem:[#allocation5 + $0xd8] sm:$0xff] }
 0x124   :  { %v555_v42 = vunpack.c.l.s8.bf16 %v463_v32  ;;  %v619_v43 = vunpack.c.l.s8.bf16 %v495_v33  ;;  %v554_v46 = vunpack.c.l.s8.bf16 %v462_v38  ;;  %v547_v56 = vunpack.c.l.s8.bf16 %v459_v44  ;;  %v884_v33 = vld [vmem:[#allocation7 + $0x80] sm:$0xff] }
 0x125   :  { %656 = vmatprep.mubr.bf16.mxu0 %v429_v47  ;;  %699 = vmatprep.mubr.bf16.mxu1 %v431_v48 }
 0x126   :  { %657 = vmatmul.mubr.bf16.vlgmr.msra.gmra.mxu0 %v2461_v51  ;;  %700 = vmatmul.mubr.bf16.vlgmr.msra.gmra.mxu1 %v2463_v52 }
 0x127   :  { %711 = vmatpush1.bf16.msra.mxu0 %v526_v49  ;;  %754 = vmatpush1.bf16.msra.mxu1 %v590_v50  ;;  %v615_v49 = vunpack.c.h.s8.bf16 %v491_v45  ;;  %v458_v50 = vld [vmem:[#allocation5 + $0xd0] sm:$0xff] }
 0x128   :  { %742 = vmatprep.mubr.bf16.mxu0 %v429_v47  ;;  %785 = vmatprep.mubr.bf16.mxu1 %v431_v48  ;;  %v618_v47 = vunpack.c.l.s8.bf16 %v494_v39  ;;  %v551_v48 = vunpack.c.h.s8.bf16 %v459_v44  ;;  %v876_v39 = vld [vmem:[#allocation7 + $0x40] sm:$0xff] }
 0x129   :  { %712 = vmatprep.subr.bf16.mxu0 %v523_v53  ;;  %755 = vmatprep.subr.bf16.mxu1 %v587_v54  ;;  %v490_v53 = vld [vmem:[#allocation5 + $0x1d0] sm:$0xff]  ;;  %v550_v54 = vunpack.c.h.s8.bf16 %v458_v50 }
 0x12a   :  { %v614_v55 = vunpack.c.h.s8.bf16 %v490_v53  ;;  %v610_v61 = vunpack.c.l.s8.bf16 %v490_v53 }
 0x12b   :  { %713 = vmatpush1.bf16.msra.mxu0 %v522_v57  ;;  %756 = vmatpush1.bf16.msra.mxu1 %v586_v58  ;;  %v611_v57 = vunpack.c.l.s8.bf16 %v491_v45  ;;  %v455_v58 = vld [vmem:[#allocation5 + $0xb8] sm:$0xff]  ;;  %v1012_v45 = vunpack.c.l.s8.bf16 %v876_v39 }
 0x12c   :  { %714 = vmatprep.subr.bf16.mxu0 %v519_v59  ;;  %757 = vmatprep.subr.bf16.mxu1 %v583_v60  ;;  %v487_v59 = vld [vmem:[#allocation5 + $0x1b8] sm:$0xff]  ;;  %v546_v60 = vunpack.c.l.s8.bf16 %v458_v50  ;;  %v543_v62 = vunpack.c.h.s8.bf16 %v455_v58  ;;  %v539_v4 = vunpack.c.l.s8.bf16 %v455_v58 }
 0x12f   :  { %715 = vmatpush1.bf16.msra.mxu0 %v518_v63  ;;  %758 = vmatpush1.bf16.msra.mxu1 %v582_v0  ;;  %v607_v63 = vunpack.c.h.s8.bf16 %v487_v59  ;;  %v454_v0 = vld [vmem:[#allocation5 + $0xb0] sm:$0xff] }
 0x130   :  { %716 = vmatprep.subr.bf16.mxu0 %v515_v1  ;;  %759 = vmatprep.subr.bf16.mxu1 %v579_v2  ;;  %v486_v1 = vld [vmem:[#allocation5 + $0x1b0] sm:$0xff]  ;;  %v542_v2 = vunpack.c.h.s8.bf16 %v454_v0 }
 0x131   :  { %v606_v3 = vunpack.c.h.s8.bf16 %v486_v1  ;;  %v602_v9 = vunpack.c.l.s8.bf16 %v486_v1 }
 0x133   :  { %717 = vmatpush1.bf16.msra.mxu0 %v514_v5  ;;  %760 = vmatpush1.bf16.msra.mxu1 %v578_v6  ;;  %v603_v5 = vunpack.c.l.s8.bf16 %v487_v59  ;;  %v451_v6 = vld [vmem:[#allocation5 + $0x98] sm:$0xff] }
 0x134   :  { %718 = vmatprep.subr.bf16.mxu0 %v511_v7  ;;  %761 = vmatprep.subr.bf16.mxu1 %v575_v8  ;;  %v483_v7 = vld [vmem:[#allocation5 + $0x198] sm:$0xff]  ;;  %v538_v8 = vunpack.c.l.s8.bf16 %v454_v0  ;;  %v535_v10 = vunpack.c.h.s8.bf16 %v451_v6  ;;  %v531_v21 = vunpack.c.l.s8.bf16 %v451_v6 }
 0x137   :  { %719 = vmatpush1.bf16.msra.mxu0 %v510_v16  ;;  %762 = vmatpush1.bf16.msra.mxu1 %v574_v17  ;;  %v599_v16 = vunpack.c.h.s8.bf16 %v483_v7  ;;  %v450_v17 = vld [vmem:[#allocation5 + $0x90] sm:$0xff] }
 0x138   :  { %720 = vmatprep.subr.bf16.mxu0 %v507_v18  ;;  %763 = vmatprep.subr.bf16.mxu1 %v571_v19  ;;  %v482_v18 = vld [vmem:[#allocation5 + $0x190] sm:$0xff]  ;;  %v534_v19 = vunpack.c.h.s8.bf16 %v450_v17 }
 0x139   :  { %v598_v20 = vunpack.c.h.s8.bf16 %v482_v18 }
 0x13b   :  { %721 = vmatpush1.bf16.msra.mxu0 %v506_v22  ;;  %764 = vmatpush1.bf16.msra.mxu1 %v570_v23  ;;  %v595_v22 = vunpack.c.l.s8.bf16 %v483_v7  ;;  %v893_v23 = vld [vmem:[#allocation7 + $0xc8] sm:$0xff] }
 0x13c   :  { %722 = vmatprep.subr.bf16.mxu0 %v503_v24  ;;  %765 = vmatprep.subr.bf16.mxu1 %v567_v25  ;;  %v530_v24 = vunpack.c.l.s8.bf16 %v450_v17  ;;  %v594_v25 = vunpack.c.l.s8.bf16 %v482_v18  ;;  %v1053_v26 = vunpack.c.h.s8.bf16 %v893_v23 }
 0x13f   :  { %723 = vmatpush1.bf16.msra.mxu0 %v502_v28  ;;  %766 = vmatpush1.bf16.msra.mxu1 %v566_v29  ;;  %v1052_v28 = vunpack.c.h.s8.bf16 %v892_v27  ;;  %v1045_v29 = vunpack.c.l.s8.bf16 %v893_v23 }
 0x140   :  { %724 = vmatprep.subr.bf16.mxu0 %v499_v30  ;;  %767 = vmatprep.subr.bf16.mxu1 %v563_v31  ;;  %v885_v30 = vld [vmem:[#allocation7 + $0x88] sm:$0xff]  ;;  %v1044_v31 = vunpack.c.l.s8.bf16 %v892_v27 }
 0x141   :  { %v1037_v32 = vunpack.c.h.s8.bf16 %v885_v30 }
 0x143   :  { %725 = vmatpush1.bf16.msra.mxu0 %v498_v34  ;;  %768 = vmatpush1.bf16.msra.mxu1 %v562_v35  ;;  %v1036_v34 = vunpack.c.h.s8.bf16 %v884_v33  ;;  %v1029_v35 = vunpack.c.l.s8.bf16 %v885_v30 }
 0x144   :  { %726 = vmatprep.subr.bf16.mxu0 %v559_v36  ;;  %769 = vmatprep.subr.bf16.mxu1 %v623_v37  ;;  %v877_v36 = vld [vmem:[#allocation7 + $0x48] sm:$0xff]  ;;  %v1028_v37 = vunpack.c.l.s8.bf16 %v884_v33 }
 0x145   :  { %v1021_v38 = vunpack.c.h.s8.bf16 %v877_v36 }
 0x147   :  { %727 = vmatpush2.bf16.msra.mxu0 %v558_v40  ;;  %770 = vmatpush2.bf16.msra.mxu1 %v622_v41  ;;  %v1020_v40 = vunpack.c.h.s8.bf16 %v876_v39  ;;  %v869_v41 = vld [vmem:[#allocation7 + $0x8] sm:$0xff] }
 0x148   :  { %728 = vmatprep.subr.bf16.mxu0 %v555_v42  ;;  %771 = vmatprep.subr.bf16.mxu1 %v619_v43  ;;  %v956_v43 = vld [vmem:[#allocation7 + $0x2c0] sm:$0xff]  ;;  %v997_v53 = vunpack.c.l.s8.bf16 %v869_v41 }
 0x149   :  { %v1180_v44 = vunpack.c.h.s8.bf16 %v956_v43 }
 0x14b   :  { %729 = vmatpush2.bf16.msra.mxu0 %v554_v46  ;;  %772 = vmatpush2.bf16.msra.mxu1 %v618_v47  ;;  %v1005_v46 = vunpack.c.h.s8.bf16 %v869_v41  ;;  %v868_v47 = vld [vmem:[#allocation7] sm:$0xff]  ;;  %v981_v41 = vld [vmem:[#allocation7 + $0x388] sm:$0xff] }
 0x14c   :  { %730 = vmatprep.subr.bf16.mxu0 %v551_v48  ;;  %773 = vmatprep.subr.bf16.mxu1 %v615_v49  ;;  %v1172_v49 = vunpack.c.l.s8.bf16 %v956_v43  ;;  %v1004_v50 = vunpack.c.h.s8.bf16 %v868_v47  ;;  %v996_v59 = vunpack.c.l.s8.bf16 %v868_v47  ;;  %v1229_v43 = vunpack.c.h.s8.bf16 %v981_v41 }
 0x14f   :  { %731 = vmatpush2.bf16.msra.mxu0 %v550_v54  ;;  %774 = vmatpush2.bf16.msra.mxu1 %v614_v55  ;;  %v949_v54 = vld [vmem:[#allocation7 + $0x288] sm:$0xff] }
 0x150   :  { %732 = vmatprep.subr.bf16.mxu0 %v547_v56  ;;  %775 = vmatprep.subr.bf16.mxu1 %v611_v57  ;;  %v925_v55 = vld [vmem:[#allocation7 + $0x1c8] sm:$0xff]  ;;  %v1165_v56 = vunpack.c.h.s8.bf16 %v949_v54  ;;  %v948_v57 = vld [vmem:[#allocation7 + $0x280] sm:$0xff] }
 0x151   :  { %v1164_v58 = vunpack.c.h.s8.bf16 %v948_v57  ;;  %v1109_v1 = vunpack.c.l.s8.bf16 %v925_v55 }
 0x153   :  { %733 = vmatpush2.bf16.msra.mxu0 %v546_v60  ;;  %776 = vmatpush2.bf16.msra.mxu1 %v610_v61  ;;  %v1117_v60 = vunpack.c.h.s8.bf16 %v925_v55  ;;  %v924_v61 = vld [vmem:[#allocation7 + $0x1c0] sm:$0xff] }
 0x154   :  { %734 = vmatprep.subr.bf16.mxu0 %v543_v62  ;;  %777 = vmatprep.subr.bf16.mxu1 %v607_v63  ;;  %v1157_v62 = vunpack.c.l.s8.bf16 %v949_v54  ;;  %v1156_v63 = vunpack.c.l.s8.bf16 %v948_v57  ;;  %v1116_v0 = vunpack.c.h.s8.bf16 %v924_v61  ;;  %v1108_v7 = vunpack.c.l.s8.bf16 %v924_v61  ;;  %v972_v54 = vld [vmem:[#allocation7 + $0x340] sm:$0xff] }
 0x155   :  { %v1212_v55 = vunpack.c.h.s8.bf16 %v972_v54  ;;  %v1204_v57 = vunpack.c.l.s8.bf16 %v972_v54  ;;  %v871_v54 = vld [vmem:[#allocation7 + $0x18] sm:$0xff] }
 0x157   :  { %735 = vmatpush2.bf16.msra.mxu0 %v542_v2  ;;  %778 = vmatpush2.bf16.msra.mxu1 %v606_v3  ;;  %v941_v2 = vld [vmem:[#allocation7 + $0x248] sm:$0xff] }
 0x158   :  { %736 = vmatprep.subr.bf16.mxu0 %v539_v4  ;;  %779 = vmatprep.subr.bf16.mxu1 %v603_v5  ;;  %v917_v3 = vld [vmem:[#allocation7 + $0x188] sm:$0xff]  ;;  %v1149_v4 = vunpack.c.h.s8.bf16 %v941_v2  ;;  %v940_v5 = vld [vmem:[#allocation7 + $0x240] sm:$0xff] }
 0x159   :  { %v1148_v6 = vunpack.c.h.s8.bf16 %v940_v5  ;;  %v1093_v18 = vunpack.c.l.s8.bf16 %v917_v3 }
 0x15b   :  { %737 = vmatpush2.bf16.msra.mxu0 %v538_v8  ;;  %780 = vmatpush2.bf16.msra.mxu1 %v602_v9  ;;  %v1101_v8 = vunpack.c.h.s8.bf16 %v917_v3  ;;  %v916_v9 = vld [vmem:[#allocation7 + $0x180] sm:$0xff] }
 0x15c   :  { %738 = vmatprep.subr.bf16.mxu0 %v535_v10  ;;  %781 = vmatprep.subr.bf16.mxu1 %v599_v16  ;;  %v1141_v10 = vunpack.c.l.s8.bf16 %v941_v2  ;;  %v1140_v16 = vunpack.c.l.s8.bf16 %v940_v5  ;;  %v1100_v17 = vunpack.c.h.s8.bf16 %v916_v9  ;;  %v2480_v2 = vld [vmem:[%s2595_s4] sm:$0xf] }
 0x15d   :  { %v805_v5 = vrot.slane %v2480_v2, %v2443_v12 }
 0x15f   :  { %739 = vmatpush2.bf16.msra.mxu0 %v534_v19  ;;  %782 = vmatpush2.bf16.msra.mxu1 %v598_v20  ;;  %v933_v19 = vld [vmem:[#allocation7 + $0x208] sm:$0xff] }
 0x160   :  { %740 = vmatprep.subr.bf16.mxu0 %v531_v21  ;;  %783 = vmatprep.subr.bf16.mxu1 %v595_v22  ;;  %v909_v20 = vld [vmem:[#allocation7 + $0x148] sm:$0xff]  ;;  %v1133_v21 = vunpack.c.h.s8.bf16 %v933_v19  ;;  %v932_v22 = vld [vmem:[#allocation7 + $0x200] sm:$0xff]  ;;  %v1125_v27 = vunpack.c.l.s8.bf16 %v933_v19 }
 0x161   :  { %v1132_v23 = vunpack.c.h.s8.bf16 %v932_v22  ;;  %v1077_v30 = vunpack.c.l.s8.bf16 %v909_v20 }
 0x163   :  { %741 = vmatpush2.bf16.msra.mxu0 %v530_v24  ;;  %784 = vmatpush2.bf16.msra.mxu1 %v594_v25  ;;  %v1092_v24 = vunpack.c.l.s8.bf16 %v916_v9  ;;  %v1085_v25 = vunpack.c.h.s8.bf16 %v909_v20 }
 0x164   :  { %1252 = vmatprep.subr.bf16.mxu0 %v1053_v26  ;;  %v908_v26 = vld [vmem:[#allocation7 + $0x140] sm:$0xff] }
 0x166   :  { %743 = vmatmul.mubr.bf16.vlgmr.msra.gmra.mxu0 %v2461_v51  ;;  %786 = vmatmul.mubr.bf16.vlgmr.msra.gmra.mxu1 %v2463_v52  ;;  %v1013_v51 = vunpack.c.l.s8.bf16 %v877_v36  ;;  %v957_v52 = vld [vmem:[#allocation7 + $0x2c8] sm:$0xff]  ;;  %v1076_v36 = vunpack.c.l.s8.bf16 %v908_v26 }
 0x167   :  { %1253 = vmatpush1.bf16.msra.mxu0 %v1052_v28  ;;  %v1181_v42 = vunpack.c.h.s8.bf16 %v957_v52  ;;  %v1173_v48 = vunpack.c.l.s8.bf16 %v957_v52  ;;  %v1124_v28 = vunpack.c.l.s8.bf16 %v932_v22 }
 0x168   :  { %1254 = vmatprep.subr.bf16.mxu0 %v1045_v29  ;;  %v1084_v29 = vunpack.c.h.s8.bf16 %v908_v26 }
 0x169   :  { %1295 = vmatprep.subr.bf16.mxu1 %v1181_v42  ;;  %v2471_v42 = vld [vmem:[#allocation7 + $0xd8] sm:$0xff] }
 0x16a   :  { %1296 = vmatpush1.bf16.msra.mxu1 %v1180_v44  ;;  %v980_v44 = vld [vmem:[#allocation7 + $0x380] sm:$0xff]  ;;  %v1055_v47 = vunpack.c.h.s8.bf16 %v2471_v42 }
 0x16b   :  { %1255 = vmatpush1.bf16.msra.mxu0 %v1044_v31  ;;  %1297 = vmatprep.subr.bf16.mxu1 %v1173_v48  ;;  %v989_v31 = vld [vmem:[#allocation7 + $0x3c8] sm:$0xff]  ;;  %v1221_v48 = vunpack.c.l.s8.bf16 %v981_v41 }
 0x16c   :  { %1256 = vmatprep.subr.bf16.mxu0 %v1037_v32  ;;  %v901_v32 = vld [vmem:[#allocation7 + $0x108] sm:$0xff]  ;;  %v1245_v33 = vunpack.c.h.s8.bf16 %v989_v31  ;;  %v1237_v39 = vunpack.c.l.s8.bf16 %v989_v31 }
 0x16d   :  { %v1061_v52 = vunpack.c.l.s8.bf16 %v901_v32 }
 0x16e   :  { %1298 = vmatpush1.bf16.msra.mxu1 %v1172_v49  ;;  %v1220_v49 = vunpack.c.l.s8.bf16 %v980_v44 }
 0x16f   :  { %1257 = vmatpush1.bf16.msra.mxu0 %v1036_v34  ;;  %1299 = vmatprep.subr.bf16.mxu1 %v1165_v56  ;;  %v988_v34 = vld [vmem:[#allocation7 + $0x3c0] sm:$0xff] }
 0x170   :  { %1258 = vmatprep.subr.bf16.mxu0 %v1029_v35  ;;  %v1244_v35 = vunpack.c.h.s8.bf16 %v988_v34 }
 0x172   :  { %1300 = vmatpush1.bf16.msra.mxu1 %v1164_v58  ;;  %v965_v58 = vld [vmem:[#allocation7 + $0x308] sm:$0xff] }
 0x173   :  { %1259 = vmatpush1.bf16.msra.mxu0 %v1028_v37  ;;  %1301 = vmatprep.subr.bf16.mxu1 %v1157_v62  ;;  %v1069_v37 = vunpack.c.h.s8.bf16 %v901_v32  ;;  %v1189_v62 = vunpack.c.l.s8.bf16 %v965_v58 }
 0x174   :  { %1260 = vmatprep.subr.bf16.mxu0 %v1021_v38  ;;  %v900_v38 = vld [vmem:[#allocation7 + $0x100] sm:$0xff] }
 0x176   :  { %1302 = vmatpush1.bf16.msra.mxu1 %v1156_v63 }
 0x177   :  { %1261 = vmatpush1.bf16.msra.mxu0 %v1020_v40  ;;  %1303 = vmatprep.subr.bf16.mxu1 %v1149_v4  ;;  %v1236_v40 = vunpack.c.l.s8.bf16 %v988_v34  ;;  %v894_v34 = vld [vmem:[#allocation7 + $0xd0] sm:$0xff] }
 0x178   :  { %1262 = vmatprep.subr.bf16.mxu0 %v1013_v51  ;;  %v1068_v51 = vunpack.c.h.s8.bf16 %v900_v38  ;;  %v1046_v41 = vunpack.c.l.s8.bf16 %v894_v34 }
 0x17a   :  { %1304 = vmatpush1.bf16.msra.mxu1 %v1148_v6 }
 0x17b   :  { %1263 = vmatpush1.bf16.msra.mxu0 %v1012_v45  ;;  %1305 = vmatprep.subr.bf16.mxu1 %v1141_v10  ;;  %v1228_v45 = vunpack.c.h.s8.bf16 %v980_v44  ;;  %v2489_v10 = vld [vmem:[%s2596_s5] sm:$0xf]  ;;  %v886_v44 = vld [vmem:[#allocation7 + $0x90] sm:$0xff] }
 0x17c   :  { %1264 = vmatprep.subr.bf16.mxu0 %v1005_v46  ;;  %v1060_v46 = vunpack.c.l.s8.bf16 %v900_v38  ;;  %v835_v20 = vrot.slane %v2489_v10, %v2443_v12 }
 0x17e   :  { %1306 = vmatpush1.bf16.msra.mxu1 %v1140_v16 }
 0x17f   :  { %1265 = vmatpush1.bf16.msra.mxu0 %v1004_v50  ;;  %1307 = vmatprep.subr.bf16.mxu1 %v1133_v21  ;;  %v973_v50 = vld [vmem:[#allocation7 + $0x348] sm:$0xff] }
 0x180   :  { %1266 = vmatprep.subr.bf16.mxu0 %v997_v53  ;;  %v1213_v53 = vunpack.c.h.s8.bf16 %v973_v50  ;;  %v1205_v56 = vunpack.c.l.s8.bf16 %v973_v50 }
 0x182   :  { %1308 = vmatpush1.bf16.msra.mxu1 %v1132_v23  ;;  %v831_v23 = vrot.slane %v2489_v10, %v2449_v14 }
 0x183   :  { %1267 = vmatpush1.bf16.msra.mxu0 %v996_v59  ;;  %1309 = vmatprep.subr.bf16.mxu1 %v1125_v27  ;;  %v1197_v59 = vunpack.c.h.s8.bf16 %v965_v58 }
 0x184   :  { %1268 = vmatprep.subr.bf16.mxu0 %v1117_v60  ;;  %v964_v60 = vld [vmem:[#allocation7 + $0x300] sm:$0xff] }
 0x185   :  { %v1196_v61 = vunpack.c.h.s8.bf16 %v964_v60  ;;  %v1188_v63 = vunpack.c.l.s8.bf16 %v964_v60  ;;  %v927_v60 = vld [vmem:[#allocation7 + $0x1d8] sm:$0xff] }
 0x186   :  { %1310 = vmatpush1.bf16.msra.mxu1 %v1124_v28 }
 0x187   :  { %1269 = vmatpush2.bf16.msra.mxu0 %v1116_v0  ;;  %1311 = vmatprep.subr.bf16.mxu1 %v1245_v33  ;;  %v2474_v0 = vld [vmem:[#allocation7 + $0x2d8] sm:$0xff] }
 0x188   :  { %1270 = vmatprep.subr.bf16.mxu0 %v1109_v1  ;;  %v1183_v1 = vunpack.c.h.s8.bf16 %v2474_v0 }
 0x18a   :  { %1312 = vmatpush2.bf16.msra.mxu1 %v1244_v35 }
 0x18b   :  { %1271 = vmatpush2.bf16.msra.mxu0 %v1108_v7  ;;  %1313 = vmatprep.subr.bf16.mxu1 %v1237_v39  ;;  %v801_v7 = vrot.slane %v2480_v2, %v2449_v14  ;;  %v1054_v39 = vunpack.c.h.s8.bf16 %v894_v34 }
 0x18c   :  { %1272 = vmatprep.subr.bf16.mxu0 %v1101_v8 }
 0x18e   :  { %1314 = vmatpush2.bf16.msra.mxu1 %v1236_v40 }
 0x18f   :  { %1273 = vmatpush2.bf16.msra.mxu0 %v1100_v17  ;;  %1315 = vmatprep.subr.bf16.mxu1 %v1229_v43 }
 0x190   :  { %1274 = vmatprep.subr.bf16.mxu0 %v1093_v18 }
 0x192   :  { %1316 = vmatpush2.bf16.msra.mxu1 %v1228_v45  ;;  %v1038_v45 = vunpack.c.h.s8.bf16 %v886_v44 }
 0x193   :  { %1275 = vmatpush2.bf16.msra.mxu0 %v1092_v24  ;;  %1317 = vmatprep.subr.bf16.mxu1 %v1221_v48  ;;  %v1030_v48 = vunpack.c.l.s8.bf16 %v886_v44 }
 0x194   :  { %1276 = vmatprep.subr.bf16.mxu0 %v1085_v25 }
 0x196   :  { %1318 = vmatpush2.bf16.msra.mxu1 %v1220_v49  ;;  %v878_v49 = vld [vmem:[#allocation7 + $0x50] sm:$0xff] }
 0x197   :  { %1277 = vmatpush2.bf16.msra.mxu0 %v1084_v29  ;;  %1319 = vmatprep.subr.bf16.mxu1 %v1213_v53  ;;  %v1022_v50 = vunpack.c.h.s8.bf16 %v878_v49 }
 0x198   :  { %1278 = vmatprep.subr.bf16.mxu0 %v1077_v30 }
 0x19a   :  { %1320 = vmatpush2.bf16.msra.mxu1 %v1212_v55  ;;  %v1014_v55 = vunpack.c.l.s8.bf16 %v878_v49  ;;  %v897_v49 = vld [vmem:[#allocation7 + $0xe8] sm:$0xff] }
 0x19b   :  { %1279 = vmatpush2.bf16.msra.mxu0 %v1076_v36  ;;  %1321 = vmatprep.subr.bf16.mxu1 %v1205_v56  ;;  %v1007_v56 = vunpack.c.h.s8.bf16 %v871_v54 }
 0x19c   :  { %1280 = vmatprep.subr.bf16.mxu0 %v1069_v37 }
 0x19e   :  { %1322 = vmatpush2.bf16.msra.mxu1 %v1204_v57  ;;  %v870_v57 = vld [vmem:[#allocation7 + $0x10] sm:$0xff] }
 0x19f   :  { %1281 = vmatpush2.bf16.msra.mxu0 %v1068_v51  ;;  %1323 = vmatprep.subr.bf16.mxu1 %v1197_v59  ;;  %v1047_v51 = vunpack.c.l.s8.bf16 %v2471_v42  ;;  %v1006_v58 = vunpack.c.h.s8.bf16 %v870_v57  ;;  %v999_v59 = vunpack.c.l.s8.bf16 %v871_v54 }
 0x1a0   :  { %1282 = vmatprep.subr.bf16.mxu0 %v1061_v52  ;;  %v887_v52 = vld [vmem:[#allocation7 + $0x98] sm:$0xff] }
 0x1a1   :  { %v1039_v43 = vunpack.c.h.s8.bf16 %v887_v52 }
 0x1a2   :  { %1324 = vmatpush2.bf16.msra.mxu1 %v1196_v61  ;;  %v998_v61 = vunpack.c.l.s8.bf16 %v870_v57 }
 0x1a3   :  { %1283 = vmatpush2.bf16.msra.mxu0 %v1060_v46  ;;  %1325 = vmatprep.subr.bf16.mxu1 %v1189_v62  ;;  %v1031_v46 = vunpack.c.l.s8.bf16 %v887_v52  ;;  %v1119_v62 = vunpack.c.h.s8.bf16 %v927_v60  ;;  %v839_v52 = vrot.slane %v2489_v10, %v2452_v15 }
 0x1a4   :  { %1338 = vmatprep.subr.bf16.mxu0 %v1055_v47  ;;  %v879_v47 = vld [vmem:[#allocation7 + $0x58] sm:$0xff] }
 0x1a5   :  { %v1023_v42 = vunpack.c.h.s8.bf16 %v879_v47  ;;  %v1015_v53 = vunpack.c.l.s8.bf16 %v879_v47 }
 0x1a6   :  { %1326 = vmatpush2.bf16.msra.mxu1 %v1188_v63  ;;  %v926_v63 = vld [vmem:[#allocation7 + $0x1d0] sm:$0xff] }
 0x1a7   :  { %1381 = vmatprep.subr.bf16.mxu1 %v1183_v1  ;;  %v1118_v1 = vunpack.c.h.s8.bf16 %v926_v63 }
 0x1e6   :  { %v658_v3 = vpop.f32.mrf.mxu0  ;;  %v701_v4 = vpop.f32.mrf.mxu1 }
 0x1e7   :  { %v702_v6 = vadd.f32 %v701_v4, %v658_v3  ;;  %v1111_v3 = vunpack.c.l.s8.bf16 %v927_v60  ;;  %v919_v4 = vld [vmem:[#allocation7 + $0x198] sm:$0xff] }
 0x1e8   :  { %v660_v8 = vpop.f32.mrf.mxu0  ;;  %v703_v9 = vpop.f32.mrf.mxu1 }
 0x1e9   :  { %v704_v16 = vadd.f32 %v703_v9, %v660_v8  ;;  %v818_v22 = vmul.f32 %v801_v7, %v702_v6  ;;  %v1103_v6 = vunpack.c.h.s8.bf16 %v919_v4  ;;  %v1095_v9 = vunpack.c.l.s8.bf16 %v919_v4 }
 0x1ea   :  { %v662_v17 = vpop.f32.mrf.mxu0  ;;  %v705_v18 = vpop.f32.mrf.mxu1  ;;  %v1049_v4 = vunpack.c.l.s8.bf16 %v897_v49 }
 0x1eb   :  { %v819_v19 = vmul.f32 %v805_v5, %v704_v16  ;;  %v706_v21 = vadd.f32 %v705_v18, %v662_v17  ;;  %v848_v31 = vadd.f32 %v831_v23, %v818_v22  ;;  %v911_v16 = vld [vmem:[#allocation7 + $0x158] sm:$0xff] }
 0x1ec   :  { %v664_v24 = vpop.f32.mrf.mxu0  ;;  %v707_v25 = vpop.f32.mrf.mxu1  ;;  %v1087_v18 = vunpack.c.h.s8.bf16 %v911_v16 }
 0x1ed   :  { %v822_v26 = vmul.f32 %v801_v7, %v706_v21  ;;  %v708_v27 = vadd.f32 %v707_v25, %v664_v24  ;;  %v849_v28 = vadd.f32 %v835_v20, %v819_v19  ;;  %v856_v37 = vmax.f32 %v848_v31, 0.0  ;;  %v918_v7 = vld [vmem:[#allocation7 + $0x190] sm:$0xff]  ;;  %v903_v25 = vld [vmem:[#allocation7 + $0x118] sm:$0xff] }
 0x1ee   :  { %v1102_v8 = vunpack.c.h.s8.bf16 %v918_v7  ;;  %v1094_v17 = vunpack.c.l.s8.bf16 %v918_v7  ;;  %v910_v19 = vld [vmem:[#allocation7 + $0x150] sm:$0xff]  ;;  %v813_v24 = vrot.slane %v2480_v2, %v2446_v13  ;;  %v1071_v34 = vunpack.c.h.s8.bf16 %v903_v25 }
 0x1ef   :  { %v852_v29 = vadd.f32 %v831_v23, %v822_v26  ;;  %v823_v30 = vmul.f32 %v805_v5, %v708_v27  ;;  %v857_v35 = vmax.f32 %v849_v28, 0.0  ;;  %v1110_v5 = vunpack.c.l.s8.bf16 %v926_v63 }
 0x1f0   :  { %v1079_v23 = vunpack.c.l.s8.bf16 %v911_v16  ;;  %v809_v27 = vrot.slane %v2480_v2, %v2452_v15  ;;  %v1078_v31 = vunpack.c.l.s8.bf16 %v910_v19  ;;  %v950_v16 = vld [vmem:[#allocation7 + $0x290] sm:$0xff] }
 0x1f1   :  { %v853_v32 = vadd.f32 %v835_v20, %v823_v30  ;;  %v860_v33 = vmax.f32 %v852_v29, 0.0  ;;  %v1086_v20 = vunpack.c.h.s8.bf16 %v910_v19 }
 0x1f3   :  { %v861_v36 = vmax.f32 %v853_v32, 0.0  ;;  %v2497_v40 = vpack.c.bf16 %v860_v33, %v856_v37  ;;  %v843_v37 = vrot.slane %v2489_v10, %v2446_v13  ;;  %v1057_v10 = vunpack.c.h.s8.bf16 %v897_v49 }
 0x1f5   :  { %v2495_v38 = vpack.c.bf16 %v861_v36, %v857_v35  ;;  %v902_v35 = vld [vmem:[#allocation7 + $0x110] sm:$0xff] }
 0x1f6   :  { %v1062_v54 = vunpack.c.l.s8.bf16 %v902_v35 }
 0x1f7   :  { %1284 = vmatprep.mubr.bf16.mxu0 %v2495_v38 }
 0x1f8   :  { %1285 = vmatmul.mubr.bf16.vlgmr.msra.gmra.mxu0 %v2497_v40 }
 0x1f9   :  { %1339 = vmatpush1.bf16.msra.mxu0 %v1054_v39  ;;  %1370 = vmatprep.mubr.bf16.mxu0 %v2495_v38 }
 0x1fa   :  { %1340 = vmatprep.subr.bf16.mxu0 %v1047_v51 }
 0x1fd   :  { %1341 = vmatpush1.bf16.msra.mxu0 %v1046_v41 }
 0x1fe   :  { %1342 = vmatprep.subr.bf16.mxu0 %v1039_v43 }
 0x201   :  { %1343 = vmatpush1.bf16.msra.mxu0 %v1038_v45  ;;  %v1070_v45 = vunpack.c.h.s8.bf16 %v902_v35  ;;  %v873_v35 = vld [vmem:[#allocation7 + $0x28] sm:$0xff] }
 0x202   :  { %1344 = vmatprep.subr.bf16.mxu0 %v1031_v46  ;;  %v1063_v46 = vunpack.c.l.s8.bf16 %v903_v25 }
 0x205   :  { %1345 = vmatpush1.bf16.msra.mxu0 %v1030_v48 }
 0x206   :  { %1346 = vmatprep.subr.bf16.mxu0 %v1023_v42 }
 0x209   :  { %1347 = vmatpush1.bf16.msra.mxu0 %v1022_v50 }
 0x20a   :  { %1348 = vmatprep.subr.bf16.mxu0 %v1015_v53 }
 0x20d   :  { %1349 = vmatpush1.bf16.msra.mxu0 %v1014_v55 }
 0x20e   :  { %1350 = vmatprep.subr.bf16.mxu0 %v1007_v56  ;;  %v958_v56 = vld [vmem:[#allocation7 + $0x2d0] sm:$0xff] }
 0x20f   :  { %v1174_v7 = vunpack.c.l.s8.bf16 %v958_v56 }
 0x211   :  { %1351 = vmatpush1.bf16.msra.mxu0 %v1006_v58 }
 0x212   :  { %1352 = vmatprep.subr.bf16.mxu0 %v999_v59  ;;  %v896_v59 = vld [vmem:[#allocation7 + $0xe0] sm:$0xff] }
 0x215   :  { %1353 = vmatpush1.bf16.msra.mxu0 %v998_v61 }
 0x216   :  { %1354 = vmatprep.subr.bf16.mxu0 %v1119_v62  ;;  %v1182_v62 = vunpack.c.h.s8.bf16 %v958_v56 }
 0x219   :  { %1355 = vmatpush2.bf16.msra.mxu0 %v1118_v1  ;;  %v1056_v1 = vunpack.c.h.s8.bf16 %v896_v59 }
 0x21a   :  { %1356 = vmatprep.subr.bf16.mxu0 %v1111_v3  ;;  %v1175_v3 = vunpack.c.l.s8.bf16 %v2474_v0 }
 0x21d   :  { %1357 = vmatpush2.bf16.msra.mxu0 %v1110_v5  ;;  %v951_v5 = vld [vmem:[#allocation7 + $0x298] sm:$0xff] }
 0x21e   :  { %1358 = vmatprep.subr.bf16.mxu0 %v1103_v6  ;;  %v889_v6 = vld [vmem:[#allocation7 + $0xa8] sm:$0xff] }
 0x21f   :  { %v1041_v0 = vunpack.c.h.s8.bf16 %v889_v6 }
 0x221   :  { %1359 = vmatpush2.bf16.msra.mxu0 %v1102_v8  ;;  %v1048_v8 = vunpack.c.l.s8.bf16 %v896_v59  ;;  %v921_v59 = vld [vmem:[#allocation7 + $0x1a8] sm:$0xff] }
 0x222   :  { %1360 = vmatprep.subr.bf16.mxu0 %v1095_v9  ;;  %v1167_v9 = vunpack.c.h.s8.bf16 %v951_v5 }
 0x225   :  { %1361 = vmatpush2.bf16.msra.mxu0 %v1094_v17  ;;  %v888_v17 = vld [vmem:[#allocation7 + $0xa0] sm:$0xff] }
 0x226   :  { %v744_v21 = vpop.f32.mrf.mxu0  ;;  %v787_v22 = vpop.f32.mrf.mxu1  ;;  %1362 = vmatprep.subr.bf16.mxu0 %v1087_v18  ;;  %v1166_v18 = vunpack.c.h.s8.bf16 %v950_v16  ;;  %v1040_v19 = vunpack.c.h.s8.bf16 %v888_v17  ;;  %v1032_v25 = vunpack.c.l.s8.bf16 %v888_v17 }
 0x227   :  { %v788_v26 = vadd.f32 %v787_v22, %v744_v21  ;;  %v1033_v21 = vunpack.c.l.s8.bf16 %v889_v6  ;;  %v943_v22 = vld [vmem:[#allocation7 + $0x258] sm:$0xff] }
 0x228   :  { %v746_v28 = vpop.f32.mrf.mxu0  ;;  %v789_v29 = vpop.f32.mrf.mxu1 }
 0x229   :  { %v790_v30 = vadd.f32 %v789_v29, %v746_v28  ;;  %1363 = vmatpush2.bf16.msra.mxu0 %v1086_v20  ;;  %v820_v51 = vmul.f32 %v809_v27, %v788_v26  ;;  %v1159_v20 = vunpack.c.l.s8.bf16 %v951_v5  ;;  %v1151_v26 = vunpack.c.h.s8.bf16 %v943_v22  ;;  %v880_v29 = vld [vmem:[#allocation7 + $0x60] sm:$0xff] }
 0x22a   :  { %v748_v32 = vpop.f32.mrf.mxu0  ;;  %v791_v33 = vpop.f32.mrf.mxu1  ;;  %1364 = vmatprep.subr.bf16.mxu0 %v1079_v23  ;;  %v881_v23 = vld [vmem:[#allocation7 + $0x68] sm:$0xff]  ;;  %v920_v5 = vld [vmem:[#allocation7 + $0x1a0] sm:$0xff] }
 0x22b   :  { %v821_v36 = vmul.f32 %v813_v24, %v790_v30  ;;  %v792_v39 = vadd.f32 %v791_v33, %v748_v32  ;;  %v850_v50 = vadd.f32 %v839_v52, %v820_v51  ;;  %v1025_v28 = vunpack.c.h.s8.bf16 %v881_v23  ;;  %v934_v51 = vld [vmem:[#allocation7 + $0x210] sm:$0xff] }
 0x22c   :  { %v750_v2 = vpop.f32.mrf.mxu0  ;;  %v793_v41 = vpop.f32.mrf.mxu1  ;;  %v1143_v32 = vunpack.c.l.s8.bf16 %v943_v22  ;;  %v1017_v33 = vunpack.c.l.s8.bf16 %v881_v23  ;;  %v912_v22 = vld [vmem:[#allocation7 + $0x160] sm:$0xff] }
 0x22d   :  { %v824_v43 = vmul.f32 %v809_v27, %v792_v39  ;;  %v794_v44 = vadd.f32 %v793_v41, %v750_v2  ;;  %1365 = vmatpush2.bf16.msra.mxu0 %v1078_v31  ;;  %v851_v47 = vadd.f32 %v843_v37, %v821_v36  ;;  %v858_v60 = vmax.f32 %v850_v50, 0.0  ;;  %v942_v27 = vld [vmem:[#allocation7 + $0x250] sm:$0xff]  ;;  %v872_v2 = vld [vmem:[#allocation7 + $0x20] sm:$0xff] }
 0x22e   :  { %1366 = vmatprep.subr.bf16.mxu0 %v1071_v34  ;;  %v1150_v30 = vunpack.c.h.s8.bf16 %v942_v27  ;;  %v1024_v31 = vunpack.c.h.s8.bf16 %v880_v29  ;;  %v935_v34 = vld [vmem:[#allocation7 + $0x218] sm:$0xff]  ;;  %v1142_v36 = vunpack.c.l.s8.bf16 %v942_v27  ;;  %v1134_v41 = vunpack.c.h.s8.bf16 %v934_v51  ;;  %v990_v50 = vld [vmem:[#allocation7 + $0x3d0] sm:$0xff] }
 0x22f   :  { %v854_v48 = vadd.f32 %v839_v52, %v824_v43  ;;  %v825_v42 = vmul.f32 %v813_v24, %v794_v44  ;;  %v859_v57 = vmax.f32 %v851_v47, 0.0  ;;  %v1158_v24 = vunpack.c.l.s8.bf16 %v950_v16  ;;  %v929_v47 = vld [vmem:[#allocation7 + $0x1e8] sm:$0xff]  ;;  %v975_v16 = vld [vmem:[#allocation7 + $0x358] sm:$0xff] }
 0x230   :  { %v1135_v39 = vunpack.c.h.s8.bf16 %v935_v34  ;;  %v1009_v52 = vunpack.c.h.s8.bf16 %v873_v35  ;;  %v1008_v43 = vunpack.c.h.s8.bf16 %v872_v2  ;;  %v1127_v44 = vunpack.c.l.s8.bf16 %v935_v34  ;;  %v967_v27 = vld [vmem:[#allocation7 + $0x318] sm:$0xff]  ;;  %v904_v34 = vld [vmem:[#allocation7 + $0x120] sm:$0xff] }
 0x231   :  { %v855_v53 = vadd.f32 %v843_v37, %v825_v42  ;;  %1367 = vmatpush2.bf16.msra.mxu0 %v1070_v45  ;;  %v862_v55 = vmax.f32 %v854_v48, 0.0  ;;  %v1016_v37 = vunpack.c.l.s8.bf16 %v880_v29  ;;  %v1001_v45 = vunpack.c.l.s8.bf16 %v873_v35 }
 0x232   :  { %1368 = vmatprep.subr.bf16.mxu0 %v1063_v46  ;;  %v991_v46 = vld [vmem:[#allocation7 + $0x3d8] sm:$0xff]  ;;  %v1126_v48 = vunpack.c.l.s8.bf16 %v934_v51  ;;  %v1000_v42 = vunpack.c.l.s8.bf16 %v872_v2  ;;  %v961_v51 = vld [vmem:[#allocation7 + $0x2e8] sm:$0xff] }
 0x233   :  { %v863_v58 = vmax.f32 %v855_v53, 0.0  ;;  %v2513_v63 = vpack.c.bf16 %v862_v55, %v858_v60  ;;  %v1247_v49 = vunpack.c.h.s8.bf16 %v991_v46  ;;  %v1121_v53 = vunpack.c.h.s8.bf16 %v929_v47 }
 0x234   :  { %v1246_v55 = vunpack.c.h.s8.bf16 %v990_v50  ;;  %v1238_v60 = vunpack.c.l.s8.bf16 %v990_v50 }
 0x235   :  { %v2511_v61 = vpack.c.bf16 %v863_v58, %v859_v57  ;;  %1369 = vmatpush2.bf16.msra.mxu0 %v1062_v54  ;;  %v928_v54 = vld [vmem:[#allocation7 + $0x1e0] sm:$0xff]  ;;  %v1113_v57 = vunpack.c.l.s8.bf16 %v929_v47  ;;  %v983_v58 = vld [vmem:[#allocation7 + $0x398] sm:$0xff] }
 0x236   :  { %1424 = vmatprep.subr.bf16.mxu0 %v1057_v10  ;;  %v1120_v56 = vunpack.c.h.s8.bf16 %v928_v54  ;;  %v1239_v10 = vunpack.c.l.s8.bf16 %v991_v46  ;;  %v898_v46 = vld [vmem:[#allocation7 + $0xf0] sm:$0xff] }
 0x237   :  { %1327 = vmatprep.mubr.bf16.mxu1 %v2511_v61 }
 0x238   :  { %1328 = vmatmul.mubr.bf16.vlgmr.msra.gmra.mxu1 %v2513_v63  ;;  %1371 = vmatmul.mubr.bf16.vlgmr.msra.gmra.mxu0 %v2497_v40 }
 0x239   :  { %1382 = vmatpush1.bf16.msra.mxu1 %v1182_v62  ;;  %1413 = vmatprep.mubr.bf16.mxu1 %v2511_v61  ;;  %v1112_v62 = vunpack.c.l.s8.bf16 %v928_v54 }
 0x23a   :  { %1425 = vmatpush1.bf16.msra.mxu0 %v1056_v1  ;;  %1456 = vmatprep.mubr.bf16.mxu0 %v2495_v38  ;;  %v1231_v1 = vunpack.c.h.s8.bf16 %v983_v58 }
 0x23b   :  { %1383 = vmatprep.subr.bf16.mxu1 %v1175_v3  ;;  %1426 = vmatprep.subr.bf16.mxu0 %v1049_v4  ;;  %v982_v3 = vld [vmem:[#allocation7 + $0x390] sm:$0xff]  ;;  %v1105_v4 = vunpack.c.h.s8.bf16 %v921_v59 }
 0x23c   :  { %v1230_v6 = vunpack.c.h.s8.bf16 %v982_v3  ;;  %v1222_v17 = vunpack.c.l.s8.bf16 %v982_v3  ;;  %v945_v3 = vld [vmem:[#allocation7 + $0x268] sm:$0xff] }
 0x23d   :  { %1384 = vmatpush1.bf16.msra.mxu1 %v1174_v7  ;;  %v1104_v7 = vunpack.c.h.s8.bf16 %v920_v5 }
 0x23e   :  { %1427 = vmatpush1.bf16.msra.mxu0 %v1048_v8  ;;  %1385 = vmatprep.subr.bf16.mxu1 %v1167_v9  ;;  %v1223_v8 = vunpack.c.l.s8.bf16 %v983_v58  ;;  %v1097_v9 = vunpack.c.l.s8.bf16 %v921_v59  ;;  %v890_v58 = vld [vmem:[#allocation7 + $0xb0] sm:$0xff] }
 0x23f   :  { %1428 = vmatprep.subr.bf16.mxu0 %v1041_v0  ;;  %v913_v0 = vld [vmem:[#allocation7 + $0x168] sm:$0xff] }
 0x241   :  { %1386 = vmatpush1.bf16.msra.mxu1 %v1166_v18  ;;  %v1096_v18 = vunpack.c.l.s8.bf16 %v920_v5 }
 0x242   :  { %1429 = vmatpush1.bf16.msra.mxu0 %v1040_v19  ;;  %1387 = vmatprep.subr.bf16.mxu1 %v1159_v20  ;;  %v1215_v19 = vunpack.c.h.s8.bf16 %v975_v16  ;;  %v974_v20 = vld [vmem:[#allocation7 + $0x350] sm:$0xff] }
 0x243   :  { %1430 = vmatprep.subr.bf16.mxu0 %v1033_v21  ;;  %v1089_v21 = vunpack.c.h.s8.bf16 %v913_v0  ;;  %v1214_v23 = vunpack.c.h.s8.bf16 %v974_v20  ;;  %v1206_v29 = vunpack.c.l.s8.bf16 %v974_v20  ;;  %v875_v20 = vld [vmem:[#allocation7 + $0x38] sm:$0xff] }
 0x245   :  { %1388 = vmatpush1.bf16.msra.mxu1 %v1158_v24  ;;  %v1088_v24 = vunpack.c.h.s8.bf16 %v912_v22 }
 0x246   :  { %1431 = vmatpush1.bf16.msra.mxu0 %v1032_v25  ;;  %1389 = vmatprep.subr.bf16.mxu1 %v1151_v26  ;;  %v1207_v25 = vunpack.c.l.s8.bf16 %v975_v16  ;;  %v1081_v26 = vunpack.c.l.s8.bf16 %v913_v0 }
 0x247   :  { %1432 = vmatprep.subr.bf16.mxu0 %v1025_v28  ;;  %v905_v28 = vld [vmem:[#allocation7 + $0x128] sm:$0xff] }
 0x249   :  { %1390 = vmatpush1.bf16.msra.mxu1 %v1150_v30  ;;  %v1080_v30 = vunpack.c.l.s8.bf16 %v912_v22 }
 0x24a   :  { %1433 = vmatpush1.bf16.msra.mxu0 %v1024_v31  ;;  %1391 = vmatprep.subr.bf16.mxu1 %v1143_v32  ;;  %v1199_v31 = vunpack.c.h.s8.bf16 %v967_v27  ;;  %v966_v32 = vld [vmem:[#allocation7 + $0x310] sm:$0xff] }
 0x24b   :  { %1434 = vmatprep.subr.bf16.mxu0 %v1017_v33  ;;  %v1073_v33 = vunpack.c.h.s8.bf16 %v905_v28  ;;  %v1198_v35 = vunpack.c.h.s8.bf16 %v966_v32  ;;  %v1190_v2 = vunpack.c.l.s8.bf16 %v966_v32  ;;  %v931_v32 = vld [vmem:[#allocation7 + $0x1f8] sm:$0xff] }
 0x24d   :  { %1392 = vmatpush1.bf16.msra.mxu1 %v1142_v36  ;;  %v1072_v36 = vunpack.c.h.s8.bf16 %v904_v34 }
 0x24e   :  { %1435 = vmatpush1.bf16.msra.mxu0 %v1016_v37  ;;  %1393 = vmatprep.subr.bf16.mxu1 %v1135_v39  ;;  %v1191_v37 = vunpack.c.l.s8.bf16 %v967_v27  ;;  %v1065_v39 = vunpack.c.l.s8.bf16 %v905_v28 }
 0x24f   :  { %1436 = vmatprep.subr.bf16.mxu0 %v1009_v52  ;;  %v899_v52 = vld [vmem:[#allocation7 + $0xf8] sm:$0xff] }
 0x250   :  { %v1051_v50 = vunpack.c.l.s8.bf16 %v899_v52 }
 0x251   :  { %1394 = vmatpush1.bf16.msra.mxu1 %v1134_v41  ;;  %v1064_v41 = vunpack.c.l.s8.bf16 %v904_v34 }
 0x252   :  { %1437 = vmatpush1.bf16.msra.mxu0 %v1008_v43  ;;  %1395 = vmatprep.subr.bf16.mxu1 %v1127_v44  ;;  %v1185_v43 = vunpack.c.h.s8.bf16 %v961_v51  ;;  %v960_v44 = vld [vmem:[#allocation7 + $0x2e0] sm:$0xff] }
 0x253   :  { %1438 = vmatprep.subr.bf16.mxu0 %v1001_v45  ;;  %v1059_v45 = vunpack.c.h.s8.bf16 %v899_v52  ;;  %v1184_v47 = vunpack.c.h.s8.bf16 %v960_v44  ;;  %v1176_v54 = vunpack.c.l.s8.bf16 %v960_v44  ;;  %v923_v44 = vld [vmem:[#allocation7 + $0x1b8] sm:$0xff] }
 0x255   :  { %1396 = vmatpush1.bf16.msra.mxu1 %v1126_v48  ;;  %v1058_v48 = vunpack.c.h.s8.bf16 %v898_v46 }
 0x256   :  { %1439 = vmatpush1.bf16.msra.mxu0 %v1000_v42  ;;  %1397 = vmatprep.subr.bf16.mxu1 %v1247_v49  ;;  %v1177_v42 = vunpack.c.l.s8.bf16 %v961_v51  ;;  %v953_v49 = vld [vmem:[#allocation7 + $0x2a8] sm:$0xff] }
 0x257   :  { %1440 = vmatprep.subr.bf16.mxu0 %v1121_v53  ;;  %v891_v53 = vld [vmem:[#allocation7 + $0xb8] sm:$0xff] }
 0x259   :  { %1398 = vmatpush2.bf16.msra.mxu1 %v1246_v55  ;;  %v1050_v55 = vunpack.c.l.s8.bf16 %v898_v46 }
 0x25a   :  { %1441 = vmatpush2.bf16.msra.mxu0 %v1120_v56  ;;  %1399 = vmatprep.subr.bf16.mxu1 %v1239_v10  ;;  %v1169_v56 = vunpack.c.h.s8.bf16 %v953_v49  ;;  %v952_v10 = vld [vmem:[#allocation7 + $0x2a0] sm:$0xff] }
 0x25b   :  { %1442 = vmatprep.subr.bf16.mxu0 %v1113_v57  ;;  %v1043_v57 = vunpack.c.h.s8.bf16 %v891_v53  ;;  %v1168_v59 = vunpack.c.h.s8.bf16 %v952_v10  ;;  %v1160_v5 = vunpack.c.l.s8.bf16 %v952_v10  ;;  %v915_v10 = vld [vmem:[#allocation7 + $0x178] sm:$0xff] }
 0x25d   :  { %1400 = vmatpush2.bf16.msra.mxu1 %v1238_v60  ;;  %v1042_v60 = vunpack.c.h.s8.bf16 %v890_v58 }
 0x25e   :  { %1443 = vmatpush2.bf16.msra.mxu0 %v1112_v62  ;;  %1401 = vmatprep.subr.bf16.mxu1 %v1231_v1  ;;  %v1161_v62 = vunpack.c.l.s8.bf16 %v953_v49  ;;  %v1035_v1 = vunpack.c.l.s8.bf16 %v891_v53  ;;  %v922_v49 = vld [vmem:[#allocation7 + $0x1b0] sm:$0xff] }
 0x25f   :  { %1444 = vmatprep.subr.bf16.mxu0 %v1105_v4  ;;  %v883_v4 = vld [vmem:[#allocation7 + $0x78] sm:$0xff]  ;;  %v1106_v53 = vunpack.c.h.s8.bf16 %v922_v49 }
 0x261   :  { %1402 = vmatpush2.bf16.msra.mxu1 %v1230_v6  ;;  %v1034_v6 = vunpack.c.l.s8.bf16 %v890_v58  ;;  %v1098_v58 = vunpack.c.l.s8.bf16 %v922_v49 }
 0x262   :  { %1445 = vmatpush2.bf16.msra.mxu0 %v1104_v7  ;;  %1403 = vmatprep.subr.bf16.mxu1 %v1223_v8  ;;  %v944_v7 = vld [vmem:[#allocation7 + $0x260] sm:$0xff]  ;;  %v1027_v8 = vunpack.c.h.s8.bf16 %v883_v4 }
 0x263   :  { %1446 = vmatprep.subr.bf16.mxu0 %v1097_v9  ;;  %v882_v9 = vld [vmem:[#allocation7 + $0x70] sm:$0xff]  ;;  %v1152_v16 = vunpack.c.h.s8.bf16 %v944_v7 }
 0x264   :  { %v1026_v0 = vunpack.c.h.s8.bf16 %v882_v9  ;;  %v1018_v22 = vunpack.c.l.s8.bf16 %v882_v9 }
 0x265   :  { %1404 = vmatpush2.bf16.msra.mxu1 %v1222_v17  ;;  %v1145_v17 = vunpack.c.l.s8.bf16 %v945_v3 }
 0x266   :  { %1447 = vmatpush2.bf16.msra.mxu0 %v1096_v18  ;;  %1405 = vmatprep.subr.bf16.mxu1 %v1215_v19  ;;  %v1019_v18 = vunpack.c.l.s8.bf16 %v883_v4  ;;  %v937_v19 = vld [vmem:[#allocation7 + $0x228] sm:$0xff] }
 0x267   :  { %1448 = vmatprep.subr.bf16.mxu0 %v1089_v21  ;;  %v1144_v21 = vunpack.c.l.s8.bf16 %v944_v7  ;;  %v907_v7 = vld [vmem:[#allocation7 + $0x138] sm:$0xff] }
 0x269   :  { %1406 = vmatpush2.bf16.msra.mxu1 %v1214_v23  ;;  %v1137_v23 = vunpack.c.h.s8.bf16 %v937_v19 }
 0x26a   :  { %1449 = vmatpush2.bf16.msra.mxu0 %v1088_v24  ;;  %1407 = vmatprep.subr.bf16.mxu1 %v1207_v25  ;;  %v936_v24 = vld [vmem:[#allocation7 + $0x220] sm:$0xff]  ;;  %v1011_v25 = vunpack.c.h.s8.bf16 %v875_v20 }
 0x26b   :  { %1450 = vmatprep.subr.bf16.mxu0 %v1081_v26  ;;  %v874_v26 = vld [vmem:[#allocation7 + $0x30] sm:$0xff]  ;;  %v1136_v27 = vunpack.c.h.s8.bf16 %v936_v24 }
 0x26c   :  { %v1010_v28 = vunpack.c.h.s8.bf16 %v874_v26  ;;  %v1002_v34 = vunpack.c.l.s8.bf16 %v874_v26 }
 0x26d   :  { %1408 = vmatpush2.bf16.msra.mxu1 %v1206_v29  ;;  %v1129_v29 = vunpack.c.l.s8.bf16 %v937_v19 }
 0x26e   :  { %1451 = vmatpush2.bf16.msra.mxu0 %v1080_v30  ;;  %1409 = vmatprep.subr.bf16.mxu1 %v1199_v31  ;;  %v1003_v30 = vunpack.c.l.s8.bf16 %v875_v20  ;;  %v993_v31 = vld [vmem:[#allocation7 + $0x3e8] sm:$0xff] }
 0x26f   :  { %1452 = vmatprep.subr.bf16.mxu0 %v1073_v33  ;;  %v1128_v33 = vunpack.c.l.s8.bf16 %v936_v24  ;;  %v1743_v24 = vld [vmem:[#allocation8 + $0x38] sm:$0xff] }
 0x271   :  { %1410 = vmatpush2.bf16.msra.mxu1 %v1198_v35  ;;  %v1249_v35 = vunpack.c.h.s8.bf16 %v993_v31 }
 0x272   :  { %1453 = vmatpush2.bf16.msra.mxu0 %v1072_v36  ;;  %1411 = vmatprep.subr.bf16.mxu1 %v1191_v37  ;;  %v992_v36 = vld [vmem:[#allocation7 + $0x3e0] sm:$0xff]  ;;  %v1123_v37 = vunpack.c.h.s8.bf16 %v931_v32 }
 0x273   :  { %1454 = vmatprep.subr.bf16.mxu0 %v1065_v39  ;;  %v930_v39 = vld [vmem:[#allocation7 + $0x1f0] sm:$0xff]  ;;  %v1248_v51 = vunpack.c.h.s8.bf16 %v992_v36 }
 0x274   :  { %v1122_v52 = vunpack.c.h.s8.bf16 %v930_v39  ;;  %v1114_v46 = vunpack.c.l.s8.bf16 %v930_v39 }
 0x275   :  { %1412 = vmatpush2.bf16.msra.mxu1 %v1190_v2  ;;  %v1241_v2 = vunpack.c.l.s8.bf16 %v993_v31 }
 0x276   :  { %1455 = vmatpush2.bf16.msra.mxu0 %v1064_v41  ;;  %1467 = vmatprep.subr.bf16.mxu1 %v1185_v43  ;;  %v1115_v41 = vunpack.c.l.s8.bf16 %v931_v32  ;;  %v985_v43 = vld [vmem:[#allocation7 + $0x3a8] sm:$0xff] }
 0x277   :  { %1510 = vmatprep.subr.bf16.mxu0 %v1059_v45  ;;  %v1240_v45 = vunpack.c.l.s8.bf16 %v992_v36 }
 0x278   :  { %1414 = vmatmul.mubr.bf16.vlgmr.msra.gmra.mxu1 %v2513_v63 }
 0x279   :  { %1457 = vmatmul.mubr.bf16.vlgmr.msra.gmra.mxu0 %v2497_v40  ;;  %1468 = vmatpush1.bf16.msra.mxu1 %v1184_v47  ;;  %v1233_v47 = vunpack.c.h.s8.bf16 %v985_v43 }
 0x27a   :  { %1499 = vmatprep.mubr.bf16.mxu1 %v2511_v61  ;;  %1511 = vmatpush1.bf16.msra.mxu0 %v1058_v48  ;;  %v984_v48 = vld [vmem:[#allocation7 + $0x3a0] sm:$0xff] }
 0x27b   :  { %1542 = vmatprep.mubr.bf16.mxu0 %v2495_v38  ;;  %1469 = vmatprep.subr.bf16.mxu1 %v1177_v42  ;;  %v1153_v38 = vunpack.c.h.s8.bf16 %v945_v3  ;;  %v1107_v42 = vunpack.c.h.s8.bf16 %v923_v44 }
 0x27c   :  { %1512 = vmatprep.subr.bf16.mxu0 %v1051_v50  ;;  %v1232_v50 = vunpack.c.h.s8.bf16 %v984_v48 }
 0x27d   :  { %1470 = vmatpush1.bf16.msra.mxu1 %v1176_v54  ;;  %v1225_v54 = vunpack.c.l.s8.bf16 %v985_v43 }
 0x27e   :  { %1513 = vmatpush1.bf16.msra.mxu0 %v1050_v55  ;;  %1471 = vmatprep.subr.bf16.mxu1 %v1169_v56  ;;  %v1099_v55 = vunpack.c.l.s8.bf16 %v923_v44  ;;  %v977_v56 = vld [vmem:[#allocation7 + $0x368] sm:$0xff] }
 0x27f   :  { %1514 = vmatprep.subr.bf16.mxu0 %v1043_v57  ;;  %v1224_v57 = vunpack.c.l.s8.bf16 %v984_v48 }
 0x281   :  { %1472 = vmatpush1.bf16.msra.mxu1 %v1168_v59  ;;  %v1217_v59 = vunpack.c.h.s8.bf16 %v977_v56 }
 0x282   :  { %1515 = vmatpush1.bf16.msra.mxu0 %v1042_v60  ;;  %1473 = vmatprep.subr.bf16.mxu1 %v1161_v62  ;;  %v976_v60 = vld [vmem:[#allocation7 + $0x360] sm:$0xff]  ;;  %v1091_v62 = vunpack.c.h.s8.bf16 %v915_v10 }
 0x283   :  { %1516 = vmatprep.subr.bf16.mxu0 %v1035_v1  ;;  %v914_v1 = vld [vmem:[#allocation7 + $0x170] sm:$0xff]  ;;  %v1216_v3 = vunpack.c.h.s8.bf16 %v976_v60 }
 0x284   :  { %v1090_v4 = vunpack.c.h.s8.bf16 %v914_v1  ;;  %v1082_v9 = vunpack.c.l.s8.bf16 %v914_v1 }
 0x285   :  { %1474 = vmatpush1.bf16.msra.mxu1 %v1160_v5  ;;  %v1209_v5 = vunpack.c.l.s8.bf16 %v977_v56  ;;  %v939_v56 = vld [vmem:[#allocation7 + $0x238] sm:$0xff] }
 0x286   :  { %1517 = vmatpush1.bf16.msra.mxu0 %v1034_v6  ;;  %1475 = vmatprep.subr.bf16.mxu1 %v1153_v38  ;;  %v1083_v6 = vunpack.c.l.s8.bf16 %v915_v10  ;;  %v969_v38 = vld [vmem:[#allocation7 + $0x328] sm:$0xff] }
 0x287   :  { %1518 = vmatprep.subr.bf16.mxu0 %v1027_v8  ;;  %v1208_v8 = vunpack.c.l.s8.bf16 %v976_v60  ;;  %v1139_v60 = vunpack.c.h.s8.bf16 %v939_v56 }
 0x289   :  { %1476 = vmatpush1.bf16.msra.mxu1 %v1152_v16  ;;  %v1201_v16 = vunpack.c.h.s8.bf16 %v969_v38 }
 0x28a   :  { %1519 = vmatpush1.bf16.msra.mxu0 %v1026_v0  ;;  %1477 = vmatprep.subr.bf16.mxu1 %v1145_v17  ;;  %v968_v0 = vld [vmem:[#allocation7 + $0x320] sm:$0xff]  ;;  %v1075_v17 = vunpack.c.h.s8.bf16 %v907_v7 }
 0x28b   :  { %1520 = vmatprep.subr.bf16.mxu0 %v1019_v18  ;;  %v906_v18 = vld [vmem:[#allocation7 + $0x130] sm:$0xff]  ;;  %v1200_v19 = vunpack.c.h.s8.bf16 %v968_v0 }
 0x28c   :  { %v1074_v20 = vunpack.c.h.s8.bf16 %v906_v18  ;;  %v1066_v26 = vunpack.c.l.s8.bf16 %v906_v18 }
 0x28d   :  { %1478 = vmatpush1.bf16.msra.mxu1 %v1144_v21  ;;  %v1193_v21 = vunpack.c.l.s8.bf16 %v969_v38  ;;  %v995_v38 = vld [vmem:[#allocation7 + $0x3f8] sm:$0xff] }
 0x28e   :  { %1521 = vmatpush1.bf16.msra.mxu0 %v1018_v22  ;;  %1479 = vmatprep.subr.bf16.mxu1 %v1137_v23  ;;  %v1067_v22 = vunpack.c.l.s8.bf16 %v907_v7  ;;  %v963_v23 = vld [vmem:[#allocation7 + $0x2f8] sm:$0xff] }
 0x28f   :  { %1522 = vmatprep.subr.bf16.mxu0 %v1011_v25  ;;  %v1192_v25 = vunpack.c.l.s8.bf16 %v968_v0  ;;  %v1179_v32 = vunpack.c.l.s8.bf16 %v963_v23  ;;  %v1251_v0 = vunpack.c.h.s8.bf16 %v995_v38 }
 0x291   :  { %1480 = vmatpush1.bf16.msra.mxu1 %v1136_v27  ;;  %v1187_v27 = vunpack.c.h.s8.bf16 %v963_v23  ;;  %v987_v23 = vld [vmem:[#allocation7 + $0x3b8] sm:$0xff] }
 0x292   :  { %1523 = vmatpush1.bf16.msra.mxu0 %v1010_v28  ;;  %1481 = vmatprep.subr.bf16.mxu1 %v1129_v29  ;;  %v962_v28 = vld [vmem:[#allocation7 + $0x2f0] sm:$0xff]  ;;  %v1815_v29 = vunpack.c.h.s8.bf16 %v1743_v24 }
 0x293   :  { %1524 = vmatprep.subr.bf16.mxu0 %v1003_v30  ;;  %v1742_v30 = vld [vmem:[#allocation8 + $0x30] sm:$0xff]  ;;  %v1186_v31 = vunpack.c.h.s8.bf16 %v962_v28  ;;  %v1178_v36 = vunpack.c.l.s8.bf16 %v962_v28  ;;  %v1235_v28 = vunpack.c.h.s8.bf16 %v987_v23 }
 0x295   :  { %1482 = vmatpush1.bf16.msra.mxu1 %v1128_v33  ;;  %v955_v33 = vld [vmem:[#allocation7 + $0x2b8] sm:$0xff] }
 0x296   :  { %1525 = vmatpush1.bf16.msra.mxu0 %v1002_v34  ;;  %1483 = vmatprep.subr.bf16.mxu1 %v1249_v35  ;;  %v1814_v34 = vunpack.c.h.s8.bf16 %v1742_v30  ;;  %v1813_v35 = vunpack.c.l.s8.bf16 %v1743_v24  ;;  %v1171_v39 = vunpack.c.h.s8.bf16 %v955_v33  ;;  %v1163_v44 = vunpack.c.l.s8.bf16 %v955_v33 }
 0x297   :  { %1526 = vmatprep.subr.bf16.mxu0 %v1123_v37  ;;  %v1741_v37 = vld [vmem:[#allocation8 + $0x28] sm:$0xff] }
 0x299   :  { %1484 = vmatpush2.bf16.msra.mxu1 %v1248_v51  ;;  %v954_v51 = vld [vmem:[#allocation7 + $0x2b0] sm:$0xff] }
 0x29a   :  { %1527 = vmatpush2.bf16.msra.mxu0 %v1122_v52  ;;  %1485 = vmatprep.subr.bf16.mxu1 %v1241_v2  ;;  %v1812_v52 = vunpack.c.l.s8.bf16 %v1742_v30  ;;  %v1811_v2 = vunpack.c.h.s8.bf16 %v1741_v37  ;;  %v1170_v43 = vunpack.c.h.s8.bf16 %v954_v51 }
 0x29b   :  { %1528 = vmatprep.subr.bf16.mxu0 %v1115_v41  ;;  %v1740_v41 = vld [vmem:[#allocation8 + $0x20] sm:$0xff] }
 0x29c   :  { %v1808_v49 = vunpack.c.l.s8.bf16 %v1740_v41 }
 0x29d   :  { %1486 = vmatpush2.bf16.msra.mxu1 %v1240_v45  ;;  %v947_v45 = vld [vmem:[#allocation7 + $0x278] sm:$0xff] }
 0x29e   :  { %1529 = vmatpush2.bf16.msra.mxu0 %v1114_v46  ;;  %1487 = vmatprep.subr.bf16.mxu1 %v1233_v47  ;;  %v1809_v46 = vunpack.c.l.s8.bf16 %v1741_v37  ;;  %v1162_v47 = vunpack.c.l.s8.bf16 %v954_v51  ;;  %v1155_v48 = vunpack.c.h.s8.bf16 %v947_v45  ;;  %v1747_v51 = vld [vmem:[#allocation8 + $0x58] sm:$0xff] }
 0x29f   :  { %1530 = vmatprep.subr.bf16.mxu0 %v1107_v42  ;;  %v946_v42 = vld [vmem:[#allocation7 + $0x270] sm:$0xff] }
 0x2a1   :  { %1488 = vmatpush2.bf16.msra.mxu1 %v1232_v50 }
 0x2a2   :  { %1531 = vmatpush2.bf16.msra.mxu0 %v1106_v53  ;;  %1489 = vmatprep.subr.bf16.mxu1 %v1225_v54  ;;  %v1738_v53 = vld [vmem:[#allocation8 + $0x10] sm:$0xff]  ;;  %v1154_v54 = vunpack.c.h.s8.bf16 %v946_v42 }
 0x2a3   :  { %1532 = vmatprep.subr.bf16.mxu0 %v1099_v55  ;;  %v1147_v55 = vunpack.c.l.s8.bf16 %v947_v45  ;;  %v1806_v10 = vunpack.c.h.s8.bf16 %v1738_v53  ;;  %v1804_v1 = vunpack.c.l.s8.bf16 %v1738_v53 }
 0x2a5   :  { %1490 = vmatpush2.bf16.msra.mxu1 %v1224_v57 }
 0x2a6   :  { %1533 = vmatpush2.bf16.msra.mxu0 %v1098_v58  ;;  %1491 = vmatprep.subr.bf16.mxu1 %v1217_v59  ;;  %v1146_v58 = vunpack.c.l.s8.bf16 %v946_v42  ;;  %v1737_v59 = vld [vmem:[#allocation8 + $0x8] sm:$0xff] }
 0x2a7   :  { %1534 = vmatprep.subr.bf16.mxu0 %v1091_v62  ;;  %v938_v62 = vld [vmem:[#allocation7 + $0x230] sm:$0xff]  ;;  %v1745_v42 = vld [vmem:[#allocation8 + $0x48] sm:$0xff] }
 0x2a9   :  { %1492 = vmatpush2.bf16.msra.mxu1 %v1216_v3  ;;  %v1803_v3 = vunpack.c.h.s8.bf16 %v1737_v59 }
 0x2aa   :  { %1535 = vmatpush2.bf16.msra.mxu0 %v1090_v4  ;;  %1493 = vmatprep.subr.bf16.mxu1 %v1209_v5  ;;  %v1736_v4 = vld [vmem:[#allocation8] sm:$0xff]  ;;  %v1138_v5 = vunpack.c.h.s8.bf16 %v938_v62 }
 0x2ab   :  { %1536 = vmatprep.subr.bf16.mxu0 %v1083_v6  ;;  %v1131_v6 = vunpack.c.l.s8.bf16 %v939_v56  ;;  %v1802_v7 = vunpack.c.h.s8.bf16 %v1736_v4  ;;  %v1800_v18 = vunpack.c.l.s8.bf16 %v1736_v4  ;;  %v1758_v4 = vld [vmem:[#allocation8 + $0xb0] sm:$0xff] }
 0x2ad   :  { %1494 = vmatpush2.bf16.msra.mxu1 %v1208_v8  ;;  %v1801_v8 = vunpack.c.l.s8.bf16 %v1737_v59  ;;  %v1817_v59 = vunpack.c.l.s8.bf16 %v1745_v42 }
 0x2ae   :  { %1537 = vmatpush2.bf16.msra.mxu0 %v1082_v9  ;;  %1495 = vmatprep.subr.bf16.mxu1 %v1201_v16  ;;  %v1130_v9 = vunpack.c.l.s8.bf16 %v938_v62  ;;  %v1751_v16 = vld [vmem:[#allocation8 + $0x78] sm:$0xff] }
 0x2af   :  { %1538 = vmatprep.subr.bf16.mxu0 %v1075_v17  ;;  %v994_v17 = vld [vmem:[#allocation7 + $0x3f0] sm:$0xff]  ;;  %v2528_v62 = vld [vmem:[#allocation8 + $0x138] sm:$0xff] }
 0x2b1   :  { %1496 = vmatpush2.bf16.msra.mxu1 %v1200_v19  ;;  %v1831_v19 = vunpack.c.h.s8.bf16 %v1751_v16 }
 0x2b2   :  { %1539 = vmatpush2.bf16.msra.mxu0 %v1074_v20  ;;  %1497 = vmatprep.subr.bf16.mxu1 %v1193_v21  ;;  %v1750_v20 = vld [vmem:[#allocation8 + $0x70] sm:$0xff]  ;;  %v1250_v21 = vunpack.c.h.s8.bf16 %v994_v17 }
 0x2b3   :  { %1540 = vmatprep.subr.bf16.mxu0 %v1067_v22  ;;  %v1243_v22 = vunpack.c.l.s8.bf16 %v995_v38  ;;  %v1830_v24 = vunpack.c.h.s8.bf16 %v1750_v20  ;;  %v1828_v30 = vunpack.c.l.s8.bf16 %v1750_v20  ;;  %v1846_v38 = vunpack.c.h.s8.bf16 %v1758_v4 }
 0x2b5   :  { %1498 = vmatpush2.bf16.msra.mxu1 %v1192_v25  ;;  %v1829_v25 = vunpack.c.l.s8.bf16 %v1751_v16  ;;  %v1757_v16 = vld [vmem:[#allocation8 + $0xa8] sm:$0xff] }
 0x2b6   :  { %1541 = vmatpush2.bf16.msra.mxu0 %v1066_v26  ;;  %1553 = vmatprep.subr.bf16.mxu1 %v1187_v27  ;;  %v1242_v26 = vunpack.c.l.s8.bf16 %v994_v17  ;;  %v1749_v27 = vld [vmem:[#allocation8 + $0x68] sm:$0xff] }
 0x2b7   :  { %1928 = vmatprep.subr.bf16.mxu0 %v1815_v29  ;;  %v986_v29 = vld [vmem:[#allocation7 + $0x3b0] sm:$0xff]  ;;  %v1825_v37 = vunpack.c.l.s8.bf16 %v1749_v27 }
 0x2b8   :  { %1500 = vmatmul.mubr.bf16.vlgmr.msra.gmra.mxu1 %v2513_v63  ;;  %v1234_v33 = vunpack.c.h.s8.bf16 %v986_v29 }
 0x2b9   :  { %1543 = vmatmul.mubr.bf16.vlgmr.msra.gmra.mxu0 %v2497_v40  ;;  %1554 = vmatpush1.bf16.msra.mxu1 %v1186_v31  ;;  %v1810_v40 = vunpack.c.h.s8.bf16 %v1740_v41  ;;  %v1827_v31 = vunpack.c.h.s8.bf16 %v1749_v27 }
 0x2ba   :  { %1585 = vmatprep.mubr.bf16.mxu1 %v2511_v61  ;;  %1555 = vmatprep.subr.bf16.mxu1 %v1179_v32  ;;  %v1739_v61 = vld [vmem:[#allocation8 + $0x18] sm:$0xff]  ;;  %v1748_v32 = vld [vmem:[#allocation8 + $0x60] sm:$0xff] }
 0x2bb   :  { %1929 = vmatpush1.bf16.msra.mxu0 %v1814_v34  ;;  %v1807_v50 = vunpack.c.h.s8.bf16 %v1739_v61  ;;  %v1805_v57 = vunpack.c.l.s8.bf16 %v1739_v61  ;;  %v1227_v34 = vunpack.c.l.s8.bf16 %v987_v23  ;;  %v1824_v41 = vunpack.c.l.s8.bf16 %v1748_v32 }
 0x2bc   :  { %1930 = vmatprep.subr.bf16.mxu0 %v1813_v35  ;;  %v979_v35 = vld [vmem:[#allocation7 + $0x378] sm:$0xff]  ;;  %v1821_v61 = vunpack.c.l.s8.bf16 %v1747_v51  ;;  %v1843_v23 = vunpack.c.h.s8.bf16 %v1757_v16 }
 0x2bd   :  { %1556 = vmatpush1.bf16.msra.mxu1 %v1178_v36  ;;  %v1826_v36 = vunpack.c.h.s8.bf16 %v1748_v32 }
 0x2be   :  { %1557 = vmatprep.subr.bf16.mxu1 %v1171_v39  ;;  %v1226_v39 = vunpack.c.l.s8.bf16 %v986_v29 }
 0x2bf   :  { %1931 = vmatpush1.bf16.msra.mxu0 %v1812_v52  ;;  %v1219_v52 = vunpack.c.h.s8.bf16 %v979_v35 }
 0x2c0   :  { %1932 = vmatprep.subr.bf16.mxu0 %v1811_v2  ;;  %v978_v2 = vld [vmem:[#allocation7 + $0x370] sm:$0xff] }
 0x2c1   :  { %1558 = vmatpush1.bf16.msra.mxu1 %v1170_v43  ;;  %v1823_v43 = vunpack.c.h.s8.bf16 %v1747_v51  ;;  %v1218_v45 = vunpack.c.h.s8.bf16 %v978_v2 }
 0x2c2   :  { %1559 = vmatprep.subr.bf16.mxu1 %v1163_v44  ;;  %v1746_v44 = vld [vmem:[#allocation8 + $0x50] sm:$0xff] }
 0x2c3   :  { %1933 = vmatpush1.bf16.msra.mxu0 %v1810_v40  ;;  %v1211_v40 = vunpack.c.l.s8.bf16 %v979_v35  ;;  %v1820_v53 = vunpack.c.l.s8.bf16 %v1746_v44  ;;  %v1841_v35 = vunpack.c.l.s8.bf16 %v1757_v16  ;;  %v1771_v16 = vld [vmem:[#allocation8 + $0x118] sm:$0xff] }
 0x2c4   :  { %1934 = vmatprep.subr.bf16.mxu0 %v1809_v46  ;;  %v971_v46 = vld [vmem:[#allocation7 + $0x338] sm:$0xff] }
 0x2c5   :  { %1560 = vmatpush1.bf16.msra.mxu1 %v1162_v47  ;;  %v1822_v47 = vunpack.c.h.s8.bf16 %v1746_v44 }
 0x2c6   :  { %1561 = vmatprep.subr.bf16.mxu1 %v1155_v48  ;;  %v1210_v48 = vunpack.c.l.s8.bf16 %v978_v2 }
 0x2c7   :  { %1935 = vmatpush1.bf16.msra.mxu0 %v1808_v49  ;;  %v1203_v49 = vunpack.c.h.s8.bf16 %v971_v46 }
 0x2c8   :  { %1936 = vmatprep.subr.bf16.mxu0 %v1807_v50  ;;  %v970_v50 = vld [vmem:[#allocation7 + $0x330] sm:$0xff] }
 0x2c9   :  { %1562 = vmatpush1.bf16.msra.mxu1 %v1154_v54  ;;  %v1819_v54 = vunpack.c.h.s8.bf16 %v1745_v42  ;;  %v1202_v56 = vunpack.c.h.s8.bf16 %v970_v50 }
 0x2ca   :  { %1563 = vmatprep.subr.bf16.mxu1 %v1147_v55  ;;  %v1744_v55 = vld [vmem:[#allocation8 + $0x40] sm:$0xff] }
 0x2cb   :  { %1937 = vmatpush1.bf16.msra.mxu0 %v1806_v10  ;;  %v1195_v10 = vunpack.c.l.s8.bf16 %v971_v46 }
 0x2cc   :  { %1938 = vmatprep.subr.bf16.mxu0 %v1805_v57  ;;  %v1818_v57 = vunpack.c.h.s8.bf16 %v1744_v55 }
 0x2cd   :  { %1564 = vmatpush1.bf16.msra.mxu1 %v1146_v58  ;;  %v1759_v58 = vld [vmem:[#allocation8 + $0xb8] sm:$0xff] }
 0x2ce   :  { %1565 = vmatprep.subr.bf16.mxu1 %v1139_v60  ;;  %v1194_v60 = vunpack.c.l.s8.bf16 %v970_v50 }
 0x2cf   :  { %1939 = vmatpush1.bf16.msra.mxu0 %v1804_v1  ;;  %v1286_v1 = vpop.f32.mrf.mxu0 }
 0x2d0   :  { %1940 = vmatprep.subr.bf16.mxu0 %v1803_v3  ;;  %v1847_v3 = vunpack.c.h.s8.bf16 %v1759_v58 }
 0x2d1   :  { %1566 = vmatpush1.bf16.msra.mxu1 %v1138_v5  ;;  %v1816_v5 = vunpack.c.l.s8.bf16 %v1744_v55 }
 0x2d2   :  { %1567 = vmatprep.subr.bf16.mxu1 %v1131_v6  ;;  %v1879_v6 = vunpack.c.h.s8.bf16 %v2528_v62 }
 0x2d3   :  { %1941 = vmatpush1.bf16.msra.mxu0 %v1802_v7  ;;  %v1288_v7 = vpop.f32.mrf.mxu0 }
 0x2d4   :  { %1942 = vmatprep.subr.bf16.mxu0 %v1801_v8  ;;  %v1845_v8 = vunpack.c.l.s8.bf16 %v1759_v58  ;;  %v1773_v58 = vld [vmem:[#allocation8 + $0x128] sm:$0xff] }
 0x2d5   :  { %1568 = vmatpush1.bf16.msra.mxu1 %v1130_v9  ;;  %v2534_v9 = vld [vmem:[%s2598_s7] sm:$0xff] }
 0x2d6   :  { %1569 = vmatprep.subr.bf16.mxu1 %v1251_v0  ;;  %v1605_v17 = vrot.slane %v2534_v9, %v2443_v12 }
 0x2d7   :  { %1943 = vmatpush1.bf16.msra.mxu0 %v1800_v18  ;;  %v1844_v18 = vunpack.c.l.s8.bf16 %v1758_v4  ;;  %v1772_v4 = vld [vmem:[#allocation8 + $0x120] sm:$0xff] }
 0x2d8   :  { %1944 = vmatprep.subr.bf16.mxu0 %v1831_v19  ;;  %v1290_v19 = vpop.f32.mrf.mxu0 }
 0x2d9   :  { %1570 = vmatpush2.bf16.msra.mxu1 %v1250_v21  ;;  %v1601_v21 = vrot.slane %v2534_v9, %v2449_v14 }
 0x2da   :  { %1571 = vmatprep.subr.bf16.mxu1 %v1243_v22 }
 0x2db   :  { %1945 = vmatpush2.bf16.msra.mxu0 %v1830_v24  ;;  %v1756_v24 = vld [vmem:[#allocation8 + $0xa0] sm:$0xff] }
 0x2dc   :  { %1946 = vmatprep.subr.bf16.mxu0 %v1829_v25 }
 0x2dd   :  { %1572 = vmatpush2.bf16.msra.mxu1 %v1242_v26 }
 0x2de   :  { %1573 = vmatprep.subr.bf16.mxu1 %v1235_v28 }
 0x2df   :  { %1947 = vmatpush2.bf16.msra.mxu0 %v1828_v30  ;;  %v1842_v30 = vunpack.c.h.s8.bf16 %v1756_v24 }
 0x2e0   :  { %1948 = vmatprep.subr.bf16.mxu0 %v1827_v31  ;;  %v1292_v31 = vpop.f32.mrf.mxu0 }
 0x2e1   :  { %1574 = vmatpush2.bf16.msra.mxu1 %v1234_v33 }
 0x2e2   :  { %1575 = vmatprep.subr.bf16.mxu1 %v1227_v34 }
 0x2e3   :  { %1949 = vmatpush2.bf16.msra.mxu0 %v1826_v36 }
 0x2e4   :  { %1950 = vmatprep.subr.bf16.mxu0 %v1825_v37 }
 0x2e5   :  { %1576 = vmatpush2.bf16.msra.mxu1 %v1226_v39  ;;  %v1755_v39 = vld [vmem:[#allocation8 + $0x98] sm:$0xff] }
 0x2e6   :  { %1577 = vmatprep.subr.bf16.mxu1 %v1219_v52  ;;  %v1839_v44 = vunpack.c.h.s8.bf16 %v1755_v39  ;;  %v1837_v50 = vunpack.c.l.s8.bf16 %v1755_v39 }
 0x2e7   :  { %1951 = vmatpush2.bf16.msra.mxu0 %v1824_v41  ;;  %v1840_v41 = vunpack.c.l.s8.bf16 %v1756_v24 }
 0x2e8   :  { %1952 = vmatprep.subr.bf16.mxu0 %v1823_v43 }
 0x2e9   :  { %1578 = vmatpush2.bf16.msra.mxu1 %v1218_v45  ;;  %v1754_v45 = vld [vmem:[#allocation8 + $0x90] sm:$0xff] }
 0x2ea   :  { %1579 = vmatprep.subr.bf16.mxu1 %v1211_v40  ;;  %v1838_v42 = vunpack.c.h.s8.bf16 %v1754_v45 }
 0x2eb   :  { %1953 = vmatpush2.bf16.msra.mxu0 %v1822_v47  ;;  %v1774_v47 = vld [vmem:[#allocation8 + $0x130] sm:$0xff] }
 0x2ec   :  { %1954 = vmatprep.subr.bf16.mxu0 %v1821_v61  ;;  %v1878_v55 = vunpack.c.h.s8.bf16 %v1774_v47 }
 0x2ed   :  { %1580 = vmatpush2.bf16.msra.mxu1 %v1210_v48 }
 0x2ee   :  { %1581 = vmatprep.subr.bf16.mxu1 %v1203_v49 }
 0x2ef   :  { %1955 = vmatpush2.bf16.msra.mxu0 %v1820_v53 }
 0x2f0   :  { %1956 = vmatprep.subr.bf16.mxu0 %v1819_v54  ;;  %v1753_v54 = vld [vmem:[#allocation8 + $0x88] sm:$0xff] }
 0x2f1   :  { %1582 = vmatpush2.bf16.msra.mxu1 %v1202_v56 }
 0x2f2   :  { %1583 = vmatprep.subr.bf16.mxu1 %v1195_v10  ;;  %v1877_v10 = vunpack.c.l.s8.bf16 %v2528_v62  ;;  %v1874_v62 = vunpack.c.h.s8.bf16 %v1772_v4 }
 0x2f3   :  { %1957 = vmatpush2.bf16.msra.mxu0 %v1818_v57  ;;  %v1836_v57 = vunpack.c.l.s8.bf16 %v1754_v45 }
 0x2f4   :  { %1958 = vmatprep.subr.bf16.mxu0 %v1817_v59  ;;  %v1835_v59 = vunpack.c.h.s8.bf16 %v1753_v54 }
 0x2f5   :  { %1584 = vmatpush2.bf16.msra.mxu1 %v1194_v60  ;;  %v1752_v60 = vld [vmem:[#allocation8 + $0x80] sm:$0xff] }
 0x2f6   :  { %1971 = vmatprep.subr.bf16.mxu1 %v1847_v3  ;;  %v1875_v3 = vunpack.c.h.s8.bf16 %v1773_v58 }
 0x2f7   :  { %1959 = vmatpush2.bf16.msra.mxu0 %v1816_v5  ;;  %v1834_v5 = vunpack.c.h.s8.bf16 %v1752_v60 }
 0x2f8   :  { %1586 = vmatmul.mubr.bf16.vlgmr.msra.gmra.mxu1 %v2513_v63  ;;  %v1329_v0 = vpop.f32.mrf.mxu1  ;;  %2014 = vmatprep.subr.bf16.mxu0 %v1879_v6  ;;  %v2544_v63 = vld [vmem:[%s2599_s8] sm:$0xff]  ;;  %v1833_v6 = vunpack.c.l.s8.bf16 %v1753_v54 }
 0x2f9   :  { %1972 = vmatpush1.bf16.msra.mxu1 %v1846_v38  ;;  %v1330_v20 = vadd.f32 %v1329_v0, %v1286_v1  ;;  %v1663_v28 = vrot.slane %v2544_v63, %v2443_v12  ;;  %v1659_v33 = vrot.slane %v2544_v63, %v2449_v14  ;;  %v1876_v1 = vunpack.c.l.s8.bf16 %v1774_v47  ;;  %v1767_v38 = vld [vmem:[#allocation8 + $0xf8] sm:$0xff] }
 0x2fa   :  { %v1331_v22 = vpop.f32.mrf.mxu1  ;;  %1973 = vmatprep.subr.bf16.mxu1 %v1845_v8  ;;  %v1832_v8 = vunpack.c.l.s8.bf16 %v1752_v60  ;;  %v1863_v0 = vunpack.c.h.s8.bf16 %v1767_v38 }
 0x2fb   :  { %v1332_v25 = vadd.f32 %v1331_v22, %v1288_v7  ;;  %v1638_v32 = vmul.f32 %v1601_v21, %v1330_v20  ;;  %v1873_v7 = vunpack.c.l.s8.bf16 %v1773_v58  ;;  %v1770_v20 = vld [vmem:[#allocation8 + $0x110] sm:$0xff]  ;;  %v1861_v22 = vunpack.c.l.s8.bf16 %v1767_v38  ;;  %v2551_v58 = vld [vmem:[#allocation8 + $0x1b8] sm:$0xff] }
 0x2fc   :  { %v1333_v26 = vpop.f32.mrf.mxu1  ;;  %v1870_v24 = vunpack.c.h.s8.bf16 %v1770_v20  ;;  %v1778_v38 = vld [vmem:[#allocation8 + $0x150] sm:$0xff] }
 0x2fd   :  { %v1639_v27 = vmul.f32 %v1605_v17, %v1332_v25  ;;  %v1334_v29 = vadd.f32 %v1333_v26, %v1290_v19  ;;  %1974 = vmatpush1.bf16.msra.mxu1 %v1844_v18  ;;  %v1696_v43 = vadd.f32 %v1659_v33, %v1638_v32  ;;  %v1872_v18 = vunpack.c.l.s8.bf16 %v1772_v4  ;;  %v1768_v32 = vld [vmem:[#allocation8 + $0x100] sm:$0xff] }
 0x2fe   :  { %v1335_v34 = vpop.f32.mrf.mxu1  ;;  %1975 = vmatprep.subr.bf16.mxu1 %v1843_v23  ;;  %v1871_v19 = vunpack.c.h.s8.bf16 %v1771_v16  ;;  %v1765_v23 = vld [vmem:[#allocation8 + $0xe8] sm:$0xff]  ;;  %v1869_v25 = vunpack.c.l.s8.bf16 %v1771_v16  ;;  %v1911_v4 = vunpack.c.h.s8.bf16 %v2551_v58 }
 0x2ff   :  { %v1646_v36 = vmul.f32 %v1601_v21, %v1334_v29  ;;  %v1336_v37 = vadd.f32 %v1335_v34, %v1292_v31  ;;  %v1697_v51 = vadd.f32 %v1663_v28, %v1639_v27  ;;  %v1712_v49 = vmax.f32 %v1696_v43, 0.0  ;;  %v1769_v27 = vld [vmem:[#allocation8 + $0x108] sm:$0xff]  ;;  %v1764_v29 = vld [vmem:[#allocation8 + $0xe0] sm:$0xff] }
 0x300   :  { %v1867_v31 = vunpack.c.h.s8.bf16 %v1769_v27  ;;  %v1857_v34 = vunpack.c.l.s8.bf16 %v1765_v23  ;;  %v1856_v39 = vunpack.c.l.s8.bf16 %v1764_v29 }
 0x301   :  { %v1704_v52 = vadd.f32 %v1659_v33, %v1646_v36  ;;  %v1647_v2 = vmul.f32 %v1605_v17, %v1336_v37  ;;  %1976 = vmatpush1.bf16.msra.mxu1 %v1842_v30  ;;  %v1713_v61 = vmax.f32 %v1697_v51, 0.0  ;;  %v1766_v17 = vld [vmem:[#allocation8 + $0xf0] sm:$0xff]  ;;  %v1868_v30 = vunpack.c.l.s8.bf16 %v1770_v20  ;;  %v1783_v51 = vld [vmem:[#allocation8 + $0x178] sm:$0xff] }
 0x302   :  { %1977 = vmatprep.subr.bf16.mxu1 %v1841_v35  ;;  %v1862_v21 = vunpack.c.h.s8.bf16 %v1766_v17  ;;  %v1860_v26 = vunpack.c.l.s8.bf16 %v1766_v17  ;;  %v1858_v33 = vunpack.c.h.s8.bf16 %v1764_v29  ;;  %v1763_v35 = vld [vmem:[#allocation8 + $0xd8] sm:$0xff]  ;;  %v1866_v36 = vunpack.c.h.s8.bf16 %v1768_v32  ;;  %v1777_v17 = vld [vmem:[#allocation8 + $0x148] sm:$0xff] }
 0x303   :  { %v1705_v40 = vadd.f32 %v1663_v28, %v1647_v2  ;;  %v1720_v46 = vmax.f32 %v1704_v52, 0.0  ;;  %v1859_v28 = vunpack.c.h.s8.bf16 %v1765_v23  ;;  %v1865_v37 = vunpack.c.l.s8.bf16 %v1769_v27  ;;  %v1762_v2 = vld [vmem:[#allocation8 + $0xd0] sm:$0xff] }
 0x304   :  { %v1855_v52 = vunpack.c.h.s8.bf16 %v1763_v35  ;;  %v1895_v43 = vunpack.c.h.s8.bf16 %v1783_v51  ;;  %v1854_v45 = vunpack.c.h.s8.bf16 %v1762_v2  ;;  %v1609_v20 = vrot.slane %v2534_v9, %v2452_v15 }
 0x305   :  { %v1721_v48 = vmax.f32 %v1705_v40, 0.0  ;;  %1978 = vmatpush1.bf16.msra.mxu1 %v1840_v41  ;;  %v1728_v56 = vpack.c.bf16 %v1720_v46, %v1712_v49  ;;  %v1864_v41 = vunpack.c.l.s8.bf16 %v1768_v32  ;;  %v1853_v40 = vunpack.c.l.s8.bf16 %v1763_v35  ;;  %v1761_v46 = vld [vmem:[#allocation8 + $0xc8] sm:$0xff] }
 0x306   :  { %1979 = vmatprep.subr.bf16.mxu1 %v1839_v44  ;;  %v1782_v44 = vld [vmem:[#allocation8 + $0x170] sm:$0xff]  ;;  %v1851_v49 = vunpack.c.h.s8.bf16 %v1761_v46  ;;  %v1884_v23 = vunpack.c.l.s8.bf16 %v1778_v38  ;;  %v1667_v32 = vrot.slane %v2544_v63, %v2452_v15 }
 0x307   :  { %v1729_v53 = vpack.c.bf16 %v1721_v48, %v1713_v61  ;;  %v1894_v47 = vunpack.c.h.s8.bf16 %v1782_v44  ;;  %v1893_v61 = vunpack.c.l.s8.bf16 %v1783_v51  ;;  %v1852_v48 = vunpack.c.l.s8.bf16 %v1762_v2 }
 0x309   :  { %1960 = vmatprep.mubr.bf16.mxu0 %v1729_v53  ;;  %1980 = vmatpush1.bf16.msra.mxu1 %v1838_v42  ;;  %v1781_v42 = vld [vmem:[#allocation8 + $0x168] sm:$0xff]  ;;  %v1892_v53 = vunpack.c.l.s8.bf16 %v1782_v44  ;;  %v1790_v44 = vld [vmem:[#allocation8 + $0x1b0] sm:$0xff] }
 0x30a   :  { %1961 = vmatmul.mubr.bf16.vlgmr.msra.gmra.mxu0 %v1728_v56  ;;  %1981 = vmatprep.subr.bf16.mxu1 %v1837_v50  ;;  %v1760_v50 = vld [vmem:[#allocation8 + $0xc0] sm:$0xff]  ;;  %v1891_v54 = vunpack.c.h.s8.bf16 %v1781_v42 }
 0x30b   :  { %2015 = vmatpush1.bf16.msra.mxu0 %v1878_v55  ;;  %v1780_v55 = vld [vmem:[#allocation8 + $0x160] sm:$0xff]  ;;  %v1850_v56 = vunpack.c.h.s8.bf16 %v1760_v50  ;;  %v1848_v60 = vunpack.c.l.s8.bf16 %v1760_v50 }
 0x30c   :  { %2016 = vmatprep.subr.bf16.mxu0 %v1877_v10  ;;  %v1849_v10 = vunpack.c.l.s8.bf16 %v1761_v46 }
 0x30d   :  { %1982 = vmatpush1.bf16.msra.mxu1 %v1836_v57  ;;  %v1890_v57 = vunpack.c.h.s8.bf16 %v1780_v55 }
 0x30e   :  { %1983 = vmatprep.subr.bf16.mxu1 %v1835_v59  ;;  %v1889_v59 = vunpack.c.l.s8.bf16 %v1781_v42  ;;  %v1789_v42 = vld [vmem:[#allocation8 + $0x1a8] sm:$0xff] }
 0x30f   :  { %2017 = vmatpush1.bf16.msra.mxu0 %v1876_v1  ;;  %v1779_v1 = vld [vmem:[#allocation8 + $0x158] sm:$0xff]  ;;  %v1907_v50 = vunpack.c.h.s8.bf16 %v1789_v42 }
 0x310   :  { %2018 = vmatprep.subr.bf16.mxu0 %v1875_v3  ;;  %v1372_v3 = vpop.f32.mrf.mxu0  ;;  %v1885_v16 = vunpack.c.l.s8.bf16 %v1779_v1 }
 0x311   :  { %1984 = vmatpush1.bf16.msra.mxu1 %v1834_v5  ;;  %v1888_v5 = vunpack.c.l.s8.bf16 %v1780_v55  ;;  %v1905_v55 = vunpack.c.l.s8.bf16 %v1789_v42 }
 0x312   :  { %1985 = vmatprep.subr.bf16.mxu1 %v1833_v6  ;;  %v1887_v6 = vunpack.c.h.s8.bf16 %v1779_v1  ;;  %v1785_v1 = vld [vmem:[#allocation8 + $0x188] sm:$0xff] }
 0x313   :  { %2019 = vmatpush1.bf16.msra.mxu0 %v1874_v62  ;;  %v1374_v62 = vpop.f32.mrf.mxu0 }
 0x314   :  { %2020 = vmatprep.subr.bf16.mxu0 %v1873_v7  ;;  %v1886_v7 = vunpack.c.h.s8.bf16 %v1778_v38  ;;  %v1897_v38 = vunpack.c.l.s8.bf16 %v1785_v1 }
 0x315   :  { %1986 = vmatpush1.bf16.msra.mxu1 %v1832_v8 }
 0x316   :  { %1987 = vmatprep.subr.bf16.mxu1 %v1863_v0  ;;  %v1613_v0 = vrot.slane %v2534_v9, %v2446_v13 }
 0x317   :  { %2021 = vmatpush1.bf16.msra.mxu0 %v1872_v18  ;;  %v1376_v18 = vpop.f32.mrf.mxu0 }
 0x318   :  { %2022 = vmatprep.subr.bf16.mxu0 %v1871_v19 }
 0x319   :  { %1988 = vmatpush2.bf16.msra.mxu1 %v1862_v21 }
 0x31a   :  { %1989 = vmatprep.subr.bf16.mxu1 %v1861_v22 }
 0x31b   :  { %2023 = vmatpush1.bf16.msra.mxu0 %v1870_v24 }
 0x31c   :  { %2024 = vmatprep.subr.bf16.mxu0 %v1869_v25  ;;  %v1883_v25 = vunpack.c.h.s8.bf16 %v1777_v17 }
 0x31d   :  { %1990 = vmatpush2.bf16.msra.mxu1 %v1860_v26  ;;  %v1776_v26 = vld [vmem:[#allocation8 + $0x140] sm:$0xff] }
 0x31e   :  { %1991 = vmatprep.subr.bf16.mxu1 %v1859_v28  ;;  %v1671_v28 = vrot.slane %v2544_v63, %v2446_v13  ;;  %v1880_v13 = vunpack.c.l.s8.bf16 %v1776_v26 }
 0x31f   :  { %2025 = vmatpush1.bf16.msra.mxu0 %v1868_v30  ;;  %v1378_v30 = vpop.f32.mrf.mxu0 }
 0x320   :  { %2026 = vmatprep.subr.bf16.mxu0 %v1867_v31 }
 0x321   :  { %1992 = vmatpush2.bf16.msra.mxu1 %v1858_v33 }
 0x322   :  { %1993 = vmatprep.subr.bf16.mxu1 %v1857_v34 }
 0x323   :  { %2027 = vmatpush1.bf16.msra.mxu0 %v1866_v36  ;;  %v1882_v36 = vunpack.c.h.s8.bf16 %v1776_v26 }
 0x324   :  { %2028 = vmatprep.subr.bf16.mxu0 %v1865_v37  ;;  %v1881_v37 = vunpack.c.l.s8.bf16 %v1777_v17 }
 0x325   :  { %1994 = vmatpush2.bf16.msra.mxu1 %v1856_v39 }
 0x326   :  { %1995 = vmatprep.subr.bf16.mxu1 %v1855_v52 }
 0x327   :  { %2029 = vmatpush1.bf16.msra.mxu0 %v1864_v41 }
 0x328   :  { %2030 = vmatprep.subr.bf16.mxu0 %v1895_v43 }
 0x329   :  { %1996 = vmatpush2.bf16.msra.mxu1 %v1854_v45 }
 0x32a   :  { %1997 = vmatprep.subr.bf16.mxu1 %v1853_v40 }
 0x32b   :  { %2031 = vmatpush2.bf16.msra.mxu0 %v1894_v47  ;;  %v1910_v47 = vunpack.c.h.s8.bf16 %v1790_v44 }
 0x32c   :  { %2032 = vmatprep.subr.bf16.mxu0 %v1893_v61 }
 0x32d   :  { %1998 = vmatpush2.bf16.msra.mxu1 %v1852_v48  ;;  %v1909_v48 = vunpack.c.l.s8.bf16 %v2551_v58 }
 0x32e   :  { %1999 = vmatprep.subr.bf16.mxu1 %v1851_v49  ;;  %v1908_v49 = vunpack.c.l.s8.bf16 %v1790_v44  ;;  %v1792_v44 = vld [vmem:[#allocation8 + $0x1c0] sm:$0xff] }
 0x32f   :  { %2033 = vmatpush2.bf16.msra.mxu0 %v1892_v53  ;;  %v1788_v53 = vld [vmem:[#allocation8 + $0x1a0] sm:$0xff] }
 0x330   :  { %2034 = vmatprep.subr.bf16.mxu0 %v1891_v54  ;;  %v1906_v54 = vunpack.c.h.s8.bf16 %v1788_v53 }
 0x331   :  { %2000 = vmatpush2.bf16.msra.mxu1 %v1850_v56  ;;  %v1787_v56 = vld [vmem:[#allocation8 + $0x198] sm:$0xff] }
 0x332   :  { %2001 = vmatprep.subr.bf16.mxu1 %v1849_v10  ;;  %v1904_v10 = vunpack.c.l.s8.bf16 %v1788_v53 }
 0x333   :  { %2035 = vmatpush2.bf16.msra.mxu0 %v1890_v57  ;;  %v1903_v57 = vunpack.c.h.s8.bf16 %v1787_v56 }
 0x334   :  { %2036 = vmatprep.subr.bf16.mxu0 %v1889_v59  ;;  %v1786_v59 = vld [vmem:[#allocation8 + $0x190] sm:$0xff] }
 0x335   :  { %2002 = vmatpush2.bf16.msra.mxu1 %v1848_v60  ;;  %v1902_v58 = vunpack.c.h.s8.bf16 %v1786_v59  ;;  %v1901_v60 = vunpack.c.l.s8.bf16 %v1787_v56 }
 0x336   :  { %2057 = vmatprep.subr.bf16.mxu1 %v1911_v4  ;;  %v1899_v4 = vunpack.c.h.s8.bf16 %v1785_v1 }
 0x337   :  { %2037 = vmatpush2.bf16.msra.mxu0 %v1888_v5  ;;  %v1784_v5 = vld [vmem:[#allocation8 + $0x180] sm:$0xff] }
 0x338   :  { %v1415_v8 = vpop.f32.mrf.mxu1  ;;  %2038 = vmatprep.subr.bf16.mxu0 %v1887_v6  ;;  %v1898_v6 = vunpack.c.h.s8.bf16 %v1784_v5 }
 0x339   :  { %v1416_v19 = vadd.f32 %v1415_v8, %v1372_v3  ;;  %v1900_v3 = vunpack.c.l.s8.bf16 %v1786_v59  ;;  %v1912_v59 = vunpack.c.l.s8.bf16 %v1792_v44 }
 0x33a   :  { %v1417_v21 = vpop.f32.mrf.mxu1 }
 0x33b   :  { %v1418_v22 = vadd.f32 %v1417_v21, %v1374_v62  ;;  %2039 = vmatpush2.bf16.msra.mxu0 %v1886_v7  ;;  %v1640_v31 = vmul.f32 %v1609_v20, %v1416_v19  ;;  %v1799_v62 = vld [vmem:[#allocation8 + $0x1f8] sm:$0xff]  ;;  %v1896_v7 = vunpack.c.l.s8.bf16 %v1784_v5  ;;  %v1796_v21 = vld [vmem:[#allocation8 + $0x1e0] sm:$0xff] }
 0x33c   :  { %v1419_v24 = vpop.f32.mrf.mxu1  ;;  %2040 = vmatprep.subr.bf16.mxu0 %v1885_v16  ;;  %v1927_v8 = vunpack.c.h.s8.bf16 %v1799_v62  ;;  %v1798_v16 = vld [vmem:[#allocation8 + $0x1f0] sm:$0xff]  ;;  %v1925_v17 = vunpack.c.l.s8.bf16 %v1799_v62  ;;  %v1920_v26 = vunpack.c.l.s8.bf16 %v1796_v21 }
 0x33d   :  { %v1641_v27 = vmul.f32 %v1613_v0, %v1418_v22  ;;  %v1420_v29 = vadd.f32 %v1419_v24, %v1376_v18  ;;  %v1698_v2 = vadd.f32 %v1667_v32, %v1640_v31  ;;  %v1797_v18 = vld [vmem:[#allocation8 + $0x1e8] sm:$0xff]  ;;  %v1924_v19 = vunpack.c.l.s8.bf16 %v1798_v16  ;;  %v1795_v24 = vld [vmem:[#allocation8 + $0x1d8] sm:$0xff] }
 0x33e   :  { %v1421_v33 = vpop.f32.mrf.mxu1  ;;  %v1922_v22 = vunpack.c.h.s8.bf16 %v1796_v21  ;;  %v1616_v31 = vsub.s32 4, %v2440_v11 }
 0x33f   :  { %v1648_v34 = vmul.f32 %v1609_v20, %v1420_v29  ;;  %v1422_v35 = vadd.f32 %v1421_v33, %v1378_v30  ;;  %2041 = vmatpush2.bf16.msra.mxu0 %v1884_v23  ;;  %v1699_v39 = vadd.f32 %v1671_v28, %v1641_v27  ;;  %v1714_v15 = vmax.f32 %v1698_v2, 0.0 }
 0x340   :  { %2042 = vmatprep.subr.bf16.mxu0 %v1883_v25  ;;  %v1923_v20 = vunpack.c.h.s8.bf16 %v1797_v18  ;;  %v1921_v23 = vunpack.c.l.s8.bf16 %v1797_v18  ;;  %v1458_v25 = vpop.f32.mrf.mxu0  ;;  %v1919_v27 = vunpack.c.h.s8.bf16 %v1795_v24  ;;  %v1620_v29 = vsub.s32 5, %v2440_v11 }
 0x341   :  { %v1706_v51 = vadd.f32 %v1667_v32, %v1648_v34  ;;  %v1649_v52 = vmul.f32 %v1613_v0, %v1422_v35  ;;  %v1715_v45 = vmax.f32 %v1699_v39, 0.0  ;;  %v1926_v0 = vunpack.c.h.s8.bf16 %v1798_v16 }
 0x342   :  { %v1460_v30 = vpop.f32.mrf.mxu0  ;;  %v1917_v34 = vunpack.c.l.s8.bf16 %v1795_v24  ;;  %v1621_v35 = vrot.slane %v2534_v9, %v1620_v29 }
 0x343   :  { %v1707_v41 = vadd.f32 %v1671_v28, %v1649_v52  ;;  %2043 = vmatpush2.bf16.msra.mxu0 %v1882_v36  ;;  %v1722_v43 = vmax.f32 %v1706_v51, 0.0  ;;  %v1794_v28 = vld [vmem:[#allocation8 + $0x1d0] sm:$0xff]  ;;  %v1793_v36 = vld [vmem:[#allocation8 + $0x1c8] sm:$0xff]  ;;  %v1617_v51 = vrot.slane %v2534_v9, %v1616_v31 }
 0x344   :  { %2044 = vmatprep.subr.bf16.mxu0 %v1881_v37  ;;  %v1918_v32 = vunpack.c.h.s8.bf16 %v1794_v28  ;;  %v1462_v37 = vpop.f32.mrf.mxu0  ;;  %v1913_v53 = vunpack.c.l.s8.bf16 %v1793_v36 }
 0x345   :  { %v1723_v40 = vmax.f32 %v1707_v41, 0.0  ;;  %v1730_v61 = vpack.c.bf16 %v1722_v43, %v1714_v15  ;;  %v1916_v41 = vunpack.c.l.s8.bf16 %v1794_v28  ;;  %v1915_v43 = vunpack.c.h.s8.bf16 %v1793_v36 }
 0x347   :  { %v1731_v46 = vpack.c.bf16 %v1723_v40, %v1715_v45  ;;  %2045 = vmatpush2.bf16.msra.mxu0 %v1880_v13  ;;  %v1679_v40 = vrot.slane %v2544_v63, %v1620_v29 }
 0x349   :  { %2003 = vmatprep.mubr.bf16.mxu1 %v1731_v46  ;;  %v1464_v46 = vpop.f32.mrf.mxu0 }
 0x34a   :  { %2004 = vmatmul.mubr.bf16.vlgmr.msra.gmra.mxu1 %v1730_v61  ;;  %v1675_v61 = vrot.slane %v2544_v63, %v1616_v31 }
 0x34b   :  { %2058 = vmatpush1.bf16.msra.mxu1 %v1910_v47 }
 0x34c   :  { %2059 = vmatprep.subr.bf16.mxu1 %v1909_v48 }
 0x34f   :  { %2060 = vmatpush1.bf16.msra.mxu1 %v1908_v49 }
 0x350   :  { %2061 = vmatprep.subr.bf16.mxu1 %v1907_v50  ;;  %v1914_v50 = vunpack.c.h.s8.bf16 %v1792_v44 }
 0x353   :  { %2062 = vmatpush1.bf16.msra.mxu1 %v1906_v54 }
 0x354   :  { %2063 = vmatprep.subr.bf16.mxu1 %v1905_v55 }
 0x357   :  { %2064 = vmatpush1.bf16.msra.mxu1 %v1904_v10 }
 0x358   :  { %2065 = vmatprep.subr.bf16.mxu1 %v1903_v57 }
 0x35b   :  { %2066 = vmatpush1.bf16.msra.mxu1 %v1902_v58 }
 0x35c   :  { %2067 = vmatprep.subr.bf16.mxu1 %v1901_v60 }
 0x35f   :  { %2068 = vmatpush1.bf16.msra.mxu1 %v1900_v3 }
 0x360   :  { %2069 = vmatprep.subr.bf16.mxu1 %v1899_v4 }
 0x363   :  { %2070 = vmatpush1.bf16.msra.mxu1 %v1898_v6 }
 0x364   :  { %2071 = vmatprep.subr.bf16.mxu1 %v1897_v38  ;;  %v1628_v38 = vsub.s32 7, %v2440_v11 }
 0x366   :  { %v1629_v16 = vrot.slane %v2534_v9, %v1628_v38 }
 0x367   :  { %2072 = vmatpush1.bf16.msra.mxu1 %v1896_v7  ;;  %v1624_v7 = vsub.s32 6, %v2440_v11 }
 0x368   :  { %2073 = vmatprep.subr.bf16.mxu1 %v1927_v8 }
 0x369   :  { %v1625_v18 = vrot.slane %v2534_v9, %v1624_v7 }
 0x36b   :  { %2074 = vmatpush2.bf16.msra.mxu1 %v1926_v0 }
 0x36c   :  { %2075 = vmatprep.subr.bf16.mxu1 %v1925_v17 }
 0x36f   :  { %2076 = vmatpush2.bf16.msra.mxu1 %v1924_v19 }
 0x370   :  { %2077 = vmatprep.subr.bf16.mxu1 %v1923_v20 }
 0x373   :  { %2078 = vmatpush2.bf16.msra.mxu1 %v1922_v22 }
 0x374   :  { %2079 = vmatprep.subr.bf16.mxu1 %v1921_v23  ;;  %v1687_v23 = vrot.slane %v2544_v63, %v1628_v38 }
 0x377   :  { %2080 = vmatpush2.bf16.msra.mxu1 %v1920_v26 }
 0x378   :  { %v1501_v33 = vpop.f32.mrf.mxu1  ;;  %2081 = vmatprep.subr.bf16.mxu1 %v1919_v27  ;;  %v1683_v27 = vrot.slane %v2544_v63, %v1624_v7 }
 0x379   :  { %v1502_v39 = vadd.f32 %v1501_v33, %v1458_v25  ;;  %v1544_v6 = vpop.f32.mrf.mxu0 }
 0x37a   :  { %v1503_v52 = vpop.f32.mrf.mxu1 }
 0x37b   :  { %v1504_v2 = vadd.f32 %v1503_v52, %v1460_v30  ;;  %2082 = vmatpush2.bf16.msra.mxu1 %v1918_v32  ;;  %v1642_v47 = vmul.f32 %v1617_v51, %v1502_v39  ;;  %v1546_v62 = vpop.f32.mrf.mxu0 }
 0x37c   :  { %v1505_v13 = vpop.f32.mrf.mxu1  ;;  %2083 = vmatprep.subr.bf16.mxu1 %v1917_v34 }
 0x37d   :  { %v1643_v45 = vmul.f32 %v1621_v35, %v1504_v2  ;;  %v1506_v15 = vadd.f32 %v1505_v13, %v1462_v37  ;;  %v1700_v10 = vadd.f32 %v1675_v61, %v1642_v47  ;;  %v1548_v0 = vpop.f32.mrf.mxu0 }
 0x37e   :  { %v1507_v48 = vpop.f32.mrf.mxu1 }
 0x37f   :  { %v1650_v42 = vmul.f32 %v1617_v51, %v1506_v15  ;;  %v1508_v49 = vadd.f32 %v1507_v48, %v1464_v46  ;;  %2084 = vmatpush2.bf16.msra.mxu1 %v1916_v41  ;;  %v1701_v54 = vadd.f32 %v1679_v40, %v1643_v45  ;;  %v1716_v3 = vmax.f32 %v1700_v10, 0.0  ;;  %v1550_v25 = vpop.f32.mrf.mxu0  ;;  %v2100_v15 = vld [vmem:[%s2601_s10] sm:$0x3] }
 0x380   :  { %2085 = vmatprep.subr.bf16.mxu1 %v1915_v43  ;;  %v2109_v10 = vrot.slane %v2100_v15, %v2443_v12 }
 0x381   :  { %v1708_v55 = vadd.f32 %v1675_v61, %v1650_v42  ;;  %v1651_v56 = vmul.f32 %v1621_v35, %v1508_v49  ;;  %v1717_v60 = vmax.f32 %v1701_v54, 0.0  ;;  %v2105_v49 = vrot.slane %v2100_v15, %v2449_v14 }
 0x383   :  { %v1709_v57 = vadd.f32 %v1679_v40, %v1651_v56  ;;  %2086 = vmatpush2.bf16.msra.mxu1 %v1914_v50  ;;  %v1724_v58 = vmax.f32 %v1708_v55, 0.0  ;;  %v2116_v50 = vld [vmem:[%s2602_s11] sm:$0x3] }
 0x384   :  { %2087 = vmatprep.subr.bf16.mxu1 %v1913_v53 }
 0x385   :  { %v1725_v1 = vmax.f32 %v1709_v57, 0.0  ;;  %v1732_v5 = vpack.c.bf16 %v1724_v58, %v1716_v3 }
 0x387   :  { %v1733_v4 = vpack.c.bf16 %v1725_v1, %v1717_v60  ;;  %2088 = vmatpush2.bf16.msra.mxu1 %v1912_v59  ;;  %v2121_v59 = vrot.slane %v2116_v50, %v2449_v14  ;;  %v2125_v60 = vrot.slane %v2116_v50, %v2443_v12 }
 0x389   :  { %2046 = vmatprep.mubr.bf16.mxu0 %v1733_v4 }
 0x38a   :  { %2047 = vmatmul.mubr.bf16.vlgmr.msra.gmra.mxu0 %v1732_v5 }
 0x3b8   :  { %v1587_v8 = vpop.f32.mrf.mxu1 }
 0x3b9   :  { %v1588_v17 = vadd.f32 %v1587_v8, %v1544_v6 }
 0x3ba   :  { %v1589_v19 = vpop.f32.mrf.mxu1 }
 0x3bb   :  { %v1590_v20 = vadd.f32 %v1589_v19, %v1546_v62  ;;  %v1644_v26 = vmul.f32 %v1625_v18, %v1588_v17 }
 0x3bc   :  { %v1591_v21 = vpop.f32.mrf.mxu1 }
 0x3bd   :  { %v1645_v22 = vmul.f32 %v1629_v16, %v1590_v20  ;;  %v1592_v24 = vadd.f32 %v1591_v21, %v1548_v0  ;;  %v1702_v33 = vadd.f32 %v1683_v27, %v1644_v26 }
 0x3be   :  { %v1593_v28 = vpop.f32.mrf.mxu1 }
 0x3bf   :  { %v1652_v11 = vmul.f32 %v1625_v18, %v1592_v24  ;;  %v1594_v29 = vadd.f32 %v1593_v28, %v1550_v25  ;;  %v1703_v30 = vadd.f32 %v1687_v23, %v1645_v22  ;;  %v1718_v37 = vmax.f32 %v1702_v33, 0.0 }
 0x3c1   :  { %v1710_v31 = vadd.f32 %v1683_v27, %v1652_v11  ;;  %v1653_v32 = vmul.f32 %v1629_v16, %v1594_v29  ;;  %v1719_v35 = vmax.f32 %v1703_v30, 0.0 }
 0x3c3   :  { %v1711_v34 = vadd.f32 %v1687_v23, %v1653_v32  ;;  %v1726_v9 = vmax.f32 %v1710_v31, 0.0 }
 0x3c5   :  { %v1727_v36 = vmax.f32 %v1711_v34, 0.0  ;;  %v1734_v51 = vpack.c.bf16 %v1726_v9, %v1718_v37 }
 0x3c7   :  { %v1735_v39 = vpack.c.bf16 %v1727_v36, %v1719_v35 }
 0x3c9   :  { %2089 = vmatprep.mubr.bf16.mxu1 %v1735_v39 }
 0x3ca   :  { %2090 = vmatmul.mubr.bf16.vlgmr.msra.gmra.mxu1 %v1734_v51  ;;  %v1962_v52 = vpop.f32.mrf.mxu0 }
 0x3cc   :  { %v1964_v2 = vpop.f32.mrf.mxu0 }
 0x3ce   :  { %v1966_v41 = vpop.f32.mrf.mxu0 }
 0x3d0   :  { %v1968_v13 = vpop.f32.mrf.mxu0 }
 0x40a   :  { %v2005_v63 = vpop.f32.mrf.mxu1 }
 0x40b   :  { %v2006_v46 = vadd.f32 %v2005_v63, %v1962_v52 }
 0x40c   :  { %v2007_v43 = vpop.f32.mrf.mxu1 }
 0x40d   :  { %v2008_v48 = vadd.f32 %v2007_v43, %v1964_v2 }
 0x40e   :  { %v2009_v45 = vpop.f32.mrf.mxu1 }
 0x40f   :  { %v2010_v54 = vadd.f32 %v2009_v45, %v1966_v41 }
 0x410   :  { %v2011_v47 = vpop.f32.mrf.mxu1 }
 0x411   :  { %v2012_v1 = vadd.f32 %v2011_v47, %v1968_v13 }
 0x44a   :  { %v2048_v44 = vpop.f32.mrf.mxu0 }
 0x44b   :  { %v2049_v42 = vadd.f32 %v2048_v44, %v2006_v46 }
 0x44c   :  { %v2050_v40 = vpop.f32.mrf.mxu0 }
 0x44d   :  { %v2051_v55 = vadd.f32 %v2050_v40, %v2008_v48 }
 0x44e   :  { %v2052_v61 = vpop.f32.mrf.mxu0 }
 0x44f   :  { %v2053_v3 = vadd.f32 %v2052_v61, %v2010_v54 }
 0x450   :  { %v2054_v57 = vpop.f32.mrf.mxu0 }
 0x451   :  { %v2055_v38 = vadd.f32 %v2054_v57, %v2012_v1 }
 0x48a   :  { %v2091_v53 = vpop.f32.mrf.mxu1 }
 0x48b   :  { %v2092_v56 = vadd.f32 %v2091_v53, %v2049_v42 }
 0x48c   :  { %v2093_v58 = vpop.f32.mrf.mxu1 }
 0x48d   :  { %v2112_v4 = vmul.f32 %v2105_v49, %v2092_v56  ;;  %v2094_v5 = vadd.f32 %v2093_v58, %v2051_v55 }
 0x48e   :  { %v2095_v6 = vpop.f32.mrf.mxu1 }
 0x48f   :  { %v2113_v62 = vmul.f32 %v2109_v10, %v2094_v5  ;;  %v2096_v7 = vadd.f32 %v2095_v6, %v2053_v3  ;;  %v2128_v16 = vadd.f32 %v2121_v59, %v2112_v4 }
 0x490   :  { %v2097_v8 = vpop.f32.mrf.mxu1 }
 0x491   :  { %v2129_v0 = vadd.f32 %v2125_v60, %v2113_v62  ;;  %v2114_v17 = vmul.f32 %v2105_v49, %v2096_v7  ;;  %v2098_v18 = vadd.f32 %v2097_v8, %v2055_v38 }
 0x493   :  { %v2192_v19 = vpack.c.bf16 %v2129_v0, %v2128_v16  ;;  %v2115_v20 = vmul.f32 %v2109_v10, %v2098_v18  ;;  %v2130_v12 = vadd.f32 %v2121_v59, %v2114_v17 }
 0x495   :  { %2144 = vst [vmem:[%s2603_s12] sm:$0xff] %v2192_v19  ;;  %v2131_v14 = vadd.f32 %v2125_v60, %v2115_v20 }
 0x497   :  { %v2193_v21 = vpack.c.bf16 %v2131_v14, %v2130_v12 }
 0x499   :  { %2145 = vst [vmem:[%s2603_s12 + $0x8] sm:$0xff] %v2193_v21 }
 0x49a   :  { %2150 = vsyncpa [#allocation4], 1 }
 0x49b   :  { %2151 = vsyncpa [#allocation6], 1 }
 0x49c   :  { %2152 = vsyncpa [#allocation9], 1 }

</bundles_post_ra>
